<compile_context>
chip_gen: v5e
topology: v5e:2x2
jax: 0.10.0
libtpu: 0.0.40
codegen_flags: <defaults>
</compile_context>

<pallas_src>
import functools

import jax
import jax.numpy as jnp
from jax import lax
from jax.experimental import pallas as pl
from jax.experimental.pallas import tpu as pltpu


def _bilinear_weights(in_size: int, out_size: int):
    """Dense (out_size, in_size) interpolation matrix matching PyTorch bilinear
    upsampling with align_corners=False (half-pixel centers, edge clamp)."""
    scale = in_size / out_size
    dst = jnp.arange(out_size, dtype=jnp.float32)
    src = jnp.maximum((dst + 0.5) * scale - 0.5, 0.0)
    i0 = jnp.clip(jnp.floor(src).astype(jnp.int32), 0, in_size - 1)
    i1 = jnp.minimum(i0 + 1, in_size - 1)
    w1 = src - i0.astype(jnp.float32)
    w0 = 1.0 - w1
    eye = jnp.eye(in_size, dtype=jnp.float32)
    return w0[:, None] * eye[i0] + w1[:, None] * eye[i1]          # (out, in)


def _reshaped_kernel(x_ref, w_ref, b_ref, wh_ref, wwt_ref, o_ref):
    # x_ref  : (1, Cin, H, W)      input tile, NCHW (no wrapper layout ops)
    # w_ref  : (Cout, Cin)         1x1-conv weight, compute dtype
    # b_ref  : (Cout, 1, 1)        conv bias, f32 (added after the resizes)
    # wh_ref : (TOH, H)            height-resize rows for this OH tile
    # wwt_ref: (W, OW)             width-resize matrix (already transposed)
    # o_ref  : (1, Cout, TOH, OW)  output tile, NCHW
    cdt = w_ref.dtype

    x = x_ref[0].astype(cdt)                          # (Cin, H, W)
    # Put H leading so the height resize is a single edge-contraction matmul.
    xt = jnp.transpose(x, (1, 0, 2))                  # (H, Cin, W)  -- tiny relayout

    # Height resize: one MXU matmul, contracts H (leading dim of rhs).
    hr = lax.dot_general(wh_ref[...], xt, (((1,), (0,)), ((), ())),
                         preferred_element_type=jnp.float32)       # (TOH, Cin, W)

    # Width resize: one MXU matmul, contracts W (last dim of lhs).
    wr = lax.dot_general(hr.astype(cdt), wwt_ref[...], (((2,), (0,)), ((), ())),
                         preferred_element_type=jnp.float32)       # (TOH, Cin, OW)

    # 1x1 conv last (channel mix commutes with bilinear resize):
    # (Cout, Cin) @ (Cin, TOH*OW) -> big lane-dense matmul writing the output tile.
    up = jnp.transpose(wr.astype(cdt), (1, 0, 2))                  # (Cin, TOH, OW)
    out = lax.dot_general(w_ref[...], up, (((1,), (0,)), ((), ())),
                          preferred_element_type=jnp.float32)      # (Cout, TOH, OW)
    out = out + b_ref[...]                 # bias after resize (weight rows sum to 1)
    o_ref[0] = out.astype(o_ref.dtype)


def _choose_oh_tile(OH, OW, Cin, Cout, H, W):
    """Largest OH tile (divisor of OH, multiple of 8) that keeps the per-step
    VMEM working set comfortably inside the default scoped VMEM on v5e/v6e/v7x."""
    def tile_f32_bytes(toh):
        blocks = 2 * (Cin * H * W + Cout * toh * OW + toh * H)      # double-buffered
        interm = Cin * H * W + toh * Cin * (W + 2 * OW) + Cout * toh * OW
        return 4 * (blocks + interm)

    budget = 8 * 1024 * 1024
    if tile_f32_bytes(OH) <= budget:
        return OH
    cands = [d for d in range(8, OH + 1, 8)
             if OH % d == 0 and tile_f32_bytes(d) <= budget]
    return max(cands) if cands else OH


@functools.partial(jax.jit, static_argnames=("scale_factor", "compute_dtype"))
def reshaped_forward(x_nchw, conv_w, conv_b, *, scale_factor,
                     compute_dtype=jnp.bfloat16):
    """Equivalent of reshaped(in_size, out_size, scale_factor).forward(x).

    x_nchw : (N, Cin, H, W) float32 (NCHW, PyTorch convention)
    conv_w : (Cout, Cin, 1, 1)
    conv_b : (Cout,)
    returns: (N, Cout, OH, OW) float32
    """
    if isinstance(scale_factor, (tuple, list)):
        OH, OW = int(scale_factor[0]), int(scale_factor[1])
    else:
        OH = OW = int(scale_factor)

    N, Cin, H, W = x_nchw.shape
    Cout = conv_w.shape[0]

    # Tiny parameters / interpolation matrices; NO layout ops on x or the output.
    w_mat = conv_w[:, :, 0, 0].astype(compute_dtype)                 # (Cout, Cin)
    b_mat = conv_b.astype(jnp.float32).reshape(Cout, 1, 1)           # (Cout, 1, 1)
    wh = _bilinear_weights(H, OH).astype(compute_dtype)              # (OH, H)
    wwt = _bilinear_weights(W, OW).T.astype(compute_dtype)           # (W, OW)

    TOH = _choose_oh_tile(OH, OW, Cin, Cout, H, W)
    grid = (N, OH // TOH)

    itemsize = jnp.dtype(x_nchw.dtype).itemsize
    flops = 2 * N * (OH * H * Cin * W + OH * Cin * W * OW + Cout * Cin * OH * OW)
    bytes_accessed = (itemsize * N * Cin * H * W + 4 * N * Cout * OH * OW
                      + jnp.dtype(compute_dtype).itemsize
                      * (w_mat.size + wh.size + wwt.size) + 4 * b_mat.size)

    out = pl.pallas_call(
        _reshaped_kernel,
        out_shape=jax.ShapeDtypeStruct((N, Cout, OH, OW), jnp.float32),
        grid_spec=pltpu.PrefetchScalarGridSpec(
            num_scalar_prefetch=0,
            grid=grid,
            in_specs=[
                pl.BlockSpec((1, Cin, H, W), lambda n, t: (n, 0, 0, 0)),
                pl.BlockSpec((Cout, Cin), lambda n, t: (0, 0)),
                pl.BlockSpec((Cout, 1, 1), lambda n, t: (0, 0, 0)),
                pl.BlockSpec((TOH, H), lambda n, t: (t, 0)),
                pl.BlockSpec((W, OW), lambda n, t: (0, 0)),
            ],
            out_specs=pl.BlockSpec((1, Cout, TOH, OW), lambda n, t: (n, 0, t, 0)),
        ),
        compiler_params=pltpu.CompilerParams(
            dimension_semantics=("parallel", "parallel")),
        cost_estimate=pl.CostEstimate(flops=flops, transcendentals=0,
                                      bytes_accessed=int(bytes_accessed)),
    )(x_nchw, w_mat, b_mat, wh, wwt)
    return out


def _reference(x_nchw, conv_w, conv_b, OH, OW):
    """Plain-JAX f32 reference (1x1 conv then bilinear resize, conv-first order)."""
    conv = jnp.einsum('nchw,dc->ndhw', x_nchw, conv_w[:, :, 0, 0])
    conv = conv + conv_b[None, :, None, None]
    H, W = x_nchw.shape[2], x_nchw.shape[3]
    wh = _bilinear_weights(H, OH)
    ww = _bilinear_weights(W, OW)
    up = jnp.einsum('Oh,ndhw->ndOw', wh, conv)
    up = jnp.einsum('Pw,ndOw->ndOP', ww, up)
    return up


if __name__ == "__main__":
    # small, deterministic example consistent with the module
    N, in_size, out_size = 2, 4, 8
    H = W = 16
    scale_factor = 32   # Upsample(size=32) -> output spatial 32x32

    key = jax.random.PRNGKey(0)
    kx, kw, kb = jax.random.split(key, 3)
    x = jax.random.normal(kx, (N, in_size, H, W), dtype=jnp.float32)
    conv_w = jax.random.normal(kw, (out_size, in_size, 1, 1), dtype=jnp.float32) * 0.1
    conv_b = jax.random.normal(kb, (out_size,), dtype=jnp.float32) * 0.1

    ref = _reference(x, conv_w, conv_b, scale_factor, scale_factor)

    # f32 compute path: bitwise-level agreement with the reference math
    out_f32 = jax.block_until_ready(
        reshaped_forward(x, conv_w, conv_b, scale_factor=scale_factor,
                         compute_dtype=jnp.float32))
    assert out_f32.shape == (N, out_size, scale_factor, scale_factor), out_f32.shape
    assert jnp.allclose(out_f32, ref, atol=1e-4, rtol=1e-4), "f32 mismatch vs reference"

    # bf16 matmul operands (f32 accumulation): fast path, looser tolerance
    out_bf16 = jax.block_until_ready(
        reshaped_forward(x, conv_w, conv_b, scale_factor=scale_factor,
                         compute_dtype=jnp.bfloat16))
    assert out_bf16.shape == (N, out_size, scale_factor, scale_factor), out_bf16.shape
    assert jnp.allclose(out_bf16, ref, atol=1e-1, rtol=1e-1), "bf16 mismatch vs reference"

    print("KERNEL_OK")
</pallas_src>

<mosaic_0001>
module attributes {stable_mosaic.version = 11 : i64} {
  func.func @_reshaped_kernel(%arg0: i32, %arg1: i32, %arg2: memref<1x4x16x16xf32, #tpu.memory_space<vmem>>, %arg3: memref<8x4xf32, #tpu.memory_space<vmem>>, %arg4: memref<8x1x1xf32, #tpu.memory_space<vmem>>, %arg5: memref<32x16xf32, #tpu.memory_space<vmem>>, %arg6: memref<16x32xf32, #tpu.memory_space<vmem>>, %arg7: memref<1x8x32x32xf32, #tpu.memory_space<vmem>>) attributes {dimension_semantics = [#tpu.dimension_semantics<parallel>, #tpu.dimension_semantics<parallel>], iteration_bounds = array<i64: 2, 1>, scalar_prefetch = 0 : i64, scratch_operands = 0 : i64, tpu.core_type = #tpu.core_type<tc>, window_params = [{transform_indices = @transform_0, window_bounds = array<i64: 1, 4, 16, 16>}, {pipeline_mode = #tpu.pipeline_mode<synchronous>, transform_indices = @transform_1, window_bounds = array<i64: 8, 4>}, {pipeline_mode = #tpu.pipeline_mode<synchronous>, transform_indices = @transform_2, window_bounds = array<i64: 8, 1, 1>}, {transform_indices = @transform_3, window_bounds = array<i64: 32, 16>}, {pipeline_mode = #tpu.pipeline_mode<synchronous>, transform_indices = @transform_4, window_bounds = array<i64: 16, 32>}, {transform_indices = @transform_5, window_bounds = array<i64: 1, 8, 32, 32>}]} {
    %c0 = arith.constant 0 : index
    %c0_0 = arith.constant 0 : index
    %c0_1 = arith.constant 0 : index
    %c0_2 = arith.constant 0 : index
    %0 = vector.load %arg2[%c0, %c0_0, %c0_1, %c0_2] : memref<1x4x16x16xf32, #tpu.memory_space<vmem>>, vector<1x4x16x16xf32>
    %1 = vector.shape_cast %0 : vector<1x4x16x16xf32> to vector<4x16x16xf32>
    %2 = tpu.transpose %1, [1, 0, 2] : vector<4x16x16xf32> -> vector<16x4x16xf32>
    %c0_3 = arith.constant 0 : index
    %c0_4 = arith.constant 0 : index
    %3 = vector.load %arg5[%c0_3, %c0_4] : memref<32x16xf32, #tpu.memory_space<vmem>>, vector<32x16xf32>
    %cst = arith.constant dense<0.000000e+00> : vector<32x4x16xf32>
    %4 = tpu.matmul %3, %2, %cst {dimension_numbers = #tpu.dot_dimension_numbers<[1], [0], [0], [1, 2], [0, 0, 1, 1, 1, 2], [], []>} : vector<32x16xf32>, vector<16x4x16xf32>, vector<32x4x16xf32> -> vector<32x4x16xf32>
    %c0_5 = arith.constant 0 : index
    %c0_6 = arith.constant 0 : index
    %5 = vector.load %arg6[%c0_5, %c0_6] : memref<16x32xf32, #tpu.memory_space<vmem>>, vector<16x32xf32>
    %cst_7 = arith.constant dense<0.000000e+00> : vector<32x4x32xf32>
    %6 = tpu.matmul %4, %5, %cst_7 {dimension_numbers = #tpu.dot_dimension_numbers<[2], [0], [0, 1], [1], [0, 0, 0, 1, 1, 1], [], []>} : vector<32x4x16xf32>, vector<16x32xf32>, vector<32x4x32xf32> -> vector<32x4x32xf32>
    %7 = tpu.transpose %6, [1, 0, 2] : vector<32x4x32xf32> -> vector<4x32x32xf32>
    %c0_8 = arith.constant 0 : index
    %c0_9 = arith.constant 0 : index
    %8 = vector.load %arg3[%c0_8, %c0_9] : memref<8x4xf32, #tpu.memory_space<vmem>>, vector<8x4xf32>
    %cst_10 = arith.constant dense<0.000000e+00> : vector<8x32x32xf32>
    %9 = tpu.matmul %8, %7, %cst_10 {dimension_numbers = #tpu.dot_dimension_numbers<[1], [0], [0], [1, 2], [0, 0, 1, 1, 1, 2], [], []>} : vector<8x4xf32>, vector<4x32x32xf32>, vector<8x32x32xf32> -> vector<8x32x32xf32>
    %c0_11 = arith.constant 0 : index
    %c0_12 = arith.constant 0 : index
    %c0_13 = arith.constant 0 : index
    %10 = vector.load %arg4[%c0_11, %c0_12, %c0_13] : memref<8x1x1xf32, #tpu.memory_space<vmem>>, vector<8x1x1xf32>
    %11 = vector.broadcast %10 : vector<8x1x1xf32> to vector<8x32x32xf32>
    %12 = arith.addf %9, %11 : vector<8x32x32xf32>
    %c0_14 = arith.constant 0 : index
    %c0_15 = arith.constant 0 : index
    %c0_16 = arith.constant 0 : index
    %c0_17 = arith.constant 0 : index
    %13 = vector.load %arg7[%c0_14, %c0_15, %c0_16, %c0_17] : memref<1x8x32x32xf32, #tpu.memory_space<vmem>>, vector<1x8x32x32xf32>
    %14 = vector.shape_cast %13 : vector<1x8x32x32xf32> to vector<8x32x32xf32>
    %15 = vector.shape_cast %12 : vector<8x32x32xf32> to vector<1x8x32x32xf32>
    tpu.vector_store %arg7[%c0_14, %c0_15, %c0_16, %c0_17], %15 {strides = array<i32>} : memref<1x8x32x32xf32, #tpu.memory_space<vmem>>, vector<1x8x32x32xf32>,
    return
  }
  func.func @transform_0(%arg0: i32, %arg1: i32) -> (i32, i32, i32, i32) {
    %c0_i32 = arith.constant 0 : i32
    %c0_i32_0 = arith.constant 0 : i32
    %c0_i32_1 = arith.constant 0 : i32
    %c0_i32_2 = arith.constant 0 : i32
    return %arg0, %c0_i32, %c0_i32_0, %c0_i32_1 : i32, i32, i32, i32
  }
  func.func @transform_1(%arg0: i32, %arg1: i32) -> (i32, i32) {
    %c0_i32 = arith.constant 0 : i32
    %c0_i32_0 = arith.constant 0 : i32
    %c0_i32_1 = arith.constant 0 : i32
    return %c0_i32, %c0_i32_0 : i32, i32
  }
  func.func @transform_2(%arg0: i32, %arg1: i32) -> (i32, i32, i32) {
    %c0_i32 = arith.constant 0 : i32
    %c0_i32_0 = arith.constant 0 : i32
    %c0_i32_1 = arith.constant 0 : i32
    %c0_i32_2 = arith.constant 0 : i32
    return %c0_i32, %c0_i32_0, %c0_i32_1 : i32, i32, i32
  }
  func.func @transform_3(%arg0: i32, %arg1: i32) -> (i32, i32) {
    %c0_i32 = arith.constant 0 : i32
    %c0_i32_0 = arith.constant 0 : i32
    return %arg1, %c0_i32 : i32, i32
  }
  func.func @transform_4(%arg0: i32, %arg1: i32) -> (i32, i32) {
    %c0_i32 = arith.constant 0 : i32
    %c0_i32_0 = arith.constant 0 : i32
    %c0_i32_1 = arith.constant 0 : i32
    return %c0_i32, %c0_i32_0 : i32, i32
  }
  func.func @transform_5(%arg0: i32, %arg1: i32) -> (i32, i32, i32, i32) {
    %c0_i32 = arith.constant 0 : i32
    %c0_i32_0 = arith.constant 0 : i32
    %c0_i32_1 = arith.constant 0 : i32
    return %arg0, %c0_i32, %arg1, %c0_i32_0 : i32, i32, i32, i32
  }
}

</mosaic_0001>

<bundles_post_ra>
// kernel: reshaped_forward.1
= control target key start
LH: loop header
LB: loop body
LE: loop exit
PB: predicated region body
PF: predicated region fallthrough
CT: control target
= control target key end

     0   :  { %10 = vsyncpa [#allocation3], 0  ;;  %s4051_s0 = inlined_call_operand.vmem [shape: f32[2,4,16,16], index: 0, kind: input, shape index: {}]   ;;  %s4052_s1 = inlined_call_operand.vmem [shape: f32[8,4], index: 1, kind: input, shape index: {}]   ;;  %s4053_s2 = inlined_call_operand.vmem [shape: f32[8,1,1], index: 2, kind: input, shape index: {}]   ;;  %s4054_s3 = inlined_call_operand.vmem [shape: f32[32,16], index: 3, kind: input, shape index: {}]   ;;  %s4055_s4 = inlined_call_operand.vmem [shape: f32[16,32], index: 4, kind: input, shape index: {}]   ;;  %s4056_s5 = inlined_call_operand.hbm [shape: f32[2,8,32,32], index: 5, kind: output, shape index: {}]  }
   0x1   :  { %12 = vsyncpa [#allocation3 + $0x1], 0  ;;  %s3049_s18 = smov 0   ;;  %s3051_s19 = smov 0  }
   0x2   :  { %s3053_s20 = smov 0   ;;  %s3055_s21 = smov 0  }
   0x3   :  { %s3057_s22 = smov 0   ;;  %s3059_s23 = smov 0  }
   0x4 LB: > { %s2766_s24 = sadd.s32 4294967295, %s3004_s23   ;;  %s2767_s25 = sadd.s32 4294967294, %s3004_s23   ;;  %s3004_s23 = sphi %s3059_s23, %s18_s23   ;;  %s3000_s22 = sphi %s3057_s22, %s4063_s22   ;;  %s2996_s21 = sphi %s3055_s21, %s4062_s21   ;;  %s2992_s20 = sphi %s3053_s20, %s4061_s20   ;;  %s2988_s19 = sphi %s3051_s19, %s4060_s19   ;;  %s2984_s18 = sphi %s3049_s18, %s4059_s18  }
   0x5   : > { %s30_s26 = sadd.s32 1, %s3000_s22  ;;  %s154_s27 = sadd.s32 1, %s2992_s20 }
   0x6   : > { %p32_p0 = scmp.ge.s32.totalorder %s30_s26, 2  ;;  %p164_p1 = scmp.ne.s32.totalorder %s2992_s20, %s2988_s19 }
   0x7   : > { %p165_p2 = scmp.eq.s32.totalorder %s2766_s24, 1  ;;  %p170_p3 = scmp.ne.s32.totalorder %s2988_s19, %s2984_s18 }
   0x8   : > { %s4065_s26 = smov (%p32_p0, %s30_s26), 0  ;;  %p171_p5 = scmp.eq.s32.totalorder %s2767_s25, 1 }
   0x9   : > { %p3089_p4 = por %p165_p2, %p164_p1  ;;  %s149_s29 = ssub.s32 %s3000_s22, %s4065_s26 }
   0xa   : > { %p2771_p6 = scmp.ge.s32.totalorder %s3004_s23, 1  ;;  %p152_p7 = scmp.eq.s32.totalorder %s149_s29, 0 }
   0xb   : > { %p3096_p8 = por %p171_p5, %p170_p3  ;;  %p215_p9 = scmp.lt.s32.totalorder %s3004_s23, 3 }
   0xc   : > { %s3102_s6 = scalar_select %p152_p7, %s2992_s20, %s154_s27  }
   0xd   : > { %p216_p10 = pnand %p2771_p6, %p215_p9 }
   0xe   : > { %p248_p11 = scmp.lt.s32.totalorder (!%p216_p10), %s2996_s21, 1  ;;  %s3008_s12 = smov (!%p216_p10), 16  }
   0xf   : > { %219 = sbr.rel (%p216_p10) target bundleno = 1267 (0x4f3), region = 40  ;;  %s3009_s13 = smov (!%p216_p10), 48  }
  0x10   : > { %s3010_s14 = smov (!%p216_p10), 32   ;;  %s3013_s9 = smov (!%p216_p10), 112  }
  0x11   : > { %s3014_s10 = smov (!%p216_p10), 80   ;;  %s3015_s16 = smov (!%p216_p10), 64  }
  0x12   : > { %s2946_s29 = scalar_lea.hbm (!%p216_p10), %s4056_s5, 512 }
  0x14   : > { %s249_s7 = scalar_select %p248_p11, %s2996_s21, 1  ;;  %v3006_v0 = vmov 1983009808   ;;  %v3007_v2 = vmov 1934713408   ;;  %vm269_vm0 = vcmask 1047556  }
  0x15   : > { %v274_v1 = vunpack.c.l.s4 %v3006_v0  ;;  %v298_v3 = vunpack.c.l.s4 %v3007_v2  ;;  %vm517_vm1 = vcmask 130048   ;;  %vm520_vm2 = vcmask 261120  }
  0x16   : > { %s2824_s8 = sshll.u32 %s249_s7, 6  ;;  %vm523_vm3 = vcmask 392192   ;;  %vm1744_vm4 = vcmask 523264   ;;  %vm1746_vm5 = vcmask 785408   ;;  %vm1915_vm6 = vcmask 1043456  }
  0x17   : > { %s252_s11 = scalar_lea.vmem %s4051_s0, %s2824_s8  ;;  %v3109_v11 = vunpack.c.0.s8 %v274_v1  ;;  %v3111_v16 = vunpack.c.0.s8 %v298_v3  ;;  %s3012_s8 = smov 96   ;;  %vm1911_vm7 = vcmask 31744  }
  0x18   : > { %v260_v4 = vld [vmem:[%s252_s11] sm:$0xff]  ;;  %v261_v5 = vld [vmem:[%s252_s11 + $0x8] sm:$0xff]  ;;  %v262_v6 = vld [vmem:[%s252_s11 + $0x10] sm:$0xff] }
  0x19   : > { %v263_v7 = vld [vmem:[%s252_s11 + $0x18] sm:$0xff]  ;;  %v264_v8 = vld [vmem:[%s252_s11 + $0x20] sm:$0xff]  ;;  %v265_v9 = vld [vmem:[%s252_s11 + $0x28] sm:$0xff]  ;;  %v271_v10 = vrot.slane %v260_v4, 4  ;;  %v283_v12 = vrot.slane %v262_v6, 4  ;;  %v327_v13 = vrot.slane %v261_v5, 4 }
  0x1a   : > { %v266_v14 = vld [vmem:[%s252_s11 + $0x30] sm:$0xff]  ;;  %v268_v15 = vrot.slane %v264_v8, 4  ;;  %v325_v17 = vrot.slane %v265_v9, 4  ;;  %v339_v18 = vrot.slane %v263_v7, 4  ;;  %v267_v19 = vld [vmem:[%s252_s11 + $0x38] sm:$0xff] }
  0x1b   : > { %v272_v20 = vsel %vm269_vm0, %v264_v8, %v271_v10  ;;  %v281_v21 = vrot.slane %v266_v14, 4  ;;  %v284_v22 = vsel %vm269_vm0, %v266_v14, %v283_v12  ;;  %v328_v23 = vsel %vm269_vm0, %v265_v9, %v327_v13 }
  0x1c   : > { %v270_v24 = vsel %vm269_vm0, %v268_v15, %v260_v4  ;;  %v280_v25 = vperm.slane %v272_v20, %v3109_v11  ;;  %v292_v26 = vperm.slane %v284_v22, %v3109_v11  ;;  %v326_v27 = vsel %vm269_vm0, %v325_v17, %v261_v5 }
  0x1d   : > { %v276_v28 = vperm.slane %v270_v24, %v3109_v11  ;;  %v282_v29 = vsel %vm269_vm0, %v281_v21, %v262_v6  ;;  %v332_v30 = vperm.slane %v326_v27, %v3109_v11  ;;  %v336_v31 = vperm.slane %v328_v23, %v3109_v11 }
  0x1e   : > { %v288_v32 = vperm.slane %v282_v29, %v3109_v11  ;;  %v305_v33 = vrot.slane %v292_v26, 4  ;;  %v307_v34 = vrot.slane %v280_v25, 4  ;;  %v337_v35 = vrot.slane %v267_v19, 4 }
  0x1f   : > { %v295_v36 = vrot.slane %v276_v28, 4  ;;  %v340_v37 = vsel %vm269_vm0, %v267_v19, %v339_v18  ;;  %v351_v38 = vrot.slane %v332_v30, 4  ;;  %v363_v39 = vrot.slane %v336_v31, 4 }
  0x20   : > { %v293_v40 = vrot.slane %v288_v32, 4  ;;  %v306_v41 = vsel %vm269_vm0, %v305_v33, %v280_v25  ;;  %v308_v42 = vsel %vm269_vm0, %v292_v26, %v307_v34  ;;  %v338_v43 = vsel %vm269_vm0, %v337_v35, %v263_v7 }
  0x21   : > { %v296_v44 = vsel %vm269_vm0, %v288_v32, %v295_v36  ;;  %v312_v45 = vperm.slane %v306_v41, %v3111_v16  ;;  %v316_v46 = vperm.slane %v308_v42, %v3111_v16  ;;  %v344_v47 = vperm.slane %v338_v43, %v3109_v11 }
  0x22   : > { %v294_v48 = vsel %vm269_vm0, %v293_v40, %v276_v28  ;;  %v304_v49 = vperm.slane %v296_v44, %v3111_v16  ;;  %v348_v50 = vperm.slane %v340_v37, %v3109_v11 }
  0x23   : > { %v300_v51 = vperm.slane %v294_v48, %v3111_v16  ;;  %v321_v52 = vrot.slane %v312_v45, 4  ;;  %v323_v53 = vrot.slane %v316_v46, 4  ;;  %v349_v54 = vrot.slane %v344_v47, 4 }
  0x24   : > { %v319_v55 = vrot.slane %v304_v49, 4  ;;  %v352_v56 = vsel %vm269_vm0, %v344_v47, %v351_v38  ;;  %v361_v57 = vrot.slane %v348_v50, 4  ;;  %v364_v58 = vsel %vm269_vm0, %v348_v50, %v363_v39 }
  0x25   : > { %v317_v59 = vrot.slane %v300_v51, 4  ;;  %v324_v60 = vsel %vm269_vm0, 0.0, %v323_v53  ;;  %v350_v61 = vsel %vm269_vm0, %v349_v54, %v332_v30  ;;  %v360_v0 = vperm.slane %v352_v56, %v3111_v16 }
  0x26   : > { %v320_v62 = vsel %vm269_vm0, 0.0, %v319_v55  ;;  %v356_v63 = vperm.slane %v350_v61, %v3111_v16  ;;  %v362_v1 = vsel %vm269_vm0, %v361_v57, %v336_v31  ;;  %v372_v4 = vperm.slane %v364_v58, %v3111_v16 }
  0x27   : > { %v318_v2 = vsel %vm269_vm0, 0.0, %v317_v59  ;;  %v368_v3 = vperm.slane %v362_v1, %v3111_v16  ;;  %v385_v5 = vsel %vm269_vm0, %v319_v55, %v300_v51  ;;  %v322_v6 = vsel %vm269_vm0, 0.0, %v321_v52 }
  0x28   : > { %v373_v7 = vrot.slane %v356_v63, 4  ;;  %v375_v8 = vrot.slane %v360_v0, 4  ;;  %v390_v9 = vrot.slane %v320_v62, 4  ;;  %v379_v12 = vrot.slane %v372_v4, 4 }
  0x29   : > { %v377_v10 = vrot.slane %v368_v3, 4  ;;  %v396_v13 = vsel %vm269_vm0, %v323_v53, %v312_v45  ;;  %v401_v14 = vrot.slane %v324_v60, 4  ;;  %v389_v18 = vperm.slane %v385_v5, %v3109_v11 }
  0x2a   : > { %v374_v15 = vsel %vm269_vm0, 0.0, %v373_v7  ;;  %v376_v17 = vsel %vm269_vm0, 0.0, %v375_v8  ;;  %v391_v19 = vsel %vm269_vm0, %v390_v9, %v318_v2  ;;  %v380_v20 = vsel %vm269_vm0, 0.0, %v379_v12 }
  0x2b   : > { %v395_v21 = vperm.slane %v391_v19, %v3109_v11  ;;  %v400_v22 = vperm.slane %v396_v13, %v3109_v11  ;;  %v402_v23 = vsel %vm269_vm0, %v401_v14, %v322_v6  ;;  %v378_v24 = vsel %vm269_vm0, 0.0, %v377_v10 }
  0x2c   : > { %v406_v25 = vperm.slane %v402_v23, %v3109_v11  ;;  %v439_v26 = vsel %vm269_vm0, %v375_v8, %v356_v63  ;;  %v444_v27 = vrot.slane %v376_v17, 4  ;;  %v450_v30 = vsel %vm269_vm0, %v379_v12, %v368_v3 }
  0x2d   : > { %v407_v28 = vrot.slane %v395_v21, 4  ;;  %v421_v29 = vrot.slane %v400_v22, 4  ;;  %v455_v31 = vrot.slane %v380_v20, 4  ;;  %v454_v34 = vperm.slane %v450_v30, %v3109_v11 }
  0x2e   : > { %v419_v32 = vrot.slane %v406_v25, 4  ;;  %v445_v33 = vsel %vm269_vm0, %v444_v27, %v374_v15  ;;  %v409_v35 = vrot.slane %v389_v18, 4  ;;  %v443_v37 = vperm.slane %v439_v26, %v3109_v11 }
  0x2f   : > { %v408_v36 = vsel %vm269_vm0, %v407_v28, %v389_v18  ;;  %v449_v38 = vperm.slane %v445_v33, %v3109_v11  ;;  %v456_v39 = vsel %vm269_vm0, %v455_v31, %v378_v24  ;;  %v475_v43 = vrot.slane %v454_v34, 4 }
  0x30   : > { %v3170_v40 = vperm.slane %v408_v36, %v3111_v16  ;;  %v420_v41 = vsel %vm269_vm0, %v419_v32, %v400_v22  ;;  %v460_v42 = vperm.slane %v456_v39, %v3109_v11  ;;  %v410_v46 = vsel %vm269_vm0, %v395_v21, %v409_v35 }
  0x31   : > { %v426_v44 = vperm.slane %v420_v41, %v3111_v16  ;;  %v461_v45 = vrot.slane %v449_v38, 4  ;;  %v422_v47 = vsel %vm269_vm0, %v406_v25, %v421_v29  ;;  %v418_v50 = vperm.slane %v410_v46, %v3111_v16  ;;  %v383_v46 = vld [vmem:[%s4054_s3 + $0x10] sm:$0xff] }
  0x32   : > { %v433_v48 = vrot.slane %v3170_v40, 4  ;;  %v473_v49 = vrot.slane %v460_v42, 4  ;;  %v463_v51 = vrot.slane %v443_v37, 4  ;;  %v476_v53 = vsel %vm269_vm0, %v460_v42, %v475_v43  ;;  %v381_v43 = vld [vmem:[%s4054_s3] sm:$0xff] }
  0x33   : > { %v462_v52 = vsel %vm269_vm0, %v461_v45, %v443_v37  ;;  %v430_v56 = vperm.slane %v422_v47, %v3111_v16  ;;  %v484_v60 = vperm.slane %v476_v53, %v3111_v16  ;;  %v437_v63 = vrot.slane %v418_v50, 4  ;;  %v382_v45 = vld [vmem:[%s4054_s3 + $0x8] sm:$0xff]  ;;  %v384_v47 = vld [vmem:[%s4054_s3 + $0x18] sm:$0xff] }
  0x34   : > { %v468_v54 = vperm.slane %v462_v52, %v3111_v16  ;;  %v474_v55 = vsel %vm269_vm0, %v473_v49, %v454_v34  ;;  %v464_v57 = vsel %vm269_vm0, %v449_v38, %v463_v51  ;;  %v434_v61 = vsel %vm269_vm0, %v426_v44, %v433_v48 }
  0x35   : > { %v480_v58 = vperm.slane %v474_v55, %v3111_v16  ;;  %v472_v59 = vperm.slane %v464_v57, %v3111_v16  ;;  %v435_v2 = vrot.slane %v430_v56, 4  ;;  %v489_v3 = vrot.slane %v484_v60, 4 }
  0x36   : > { %v487_v62 = vrot.slane %v468_v54, 4  ;;  %v438_v4 = vsel %vm269_vm0, %v430_v56, %v437_v63  ;;  %v3011_v12 = vmov 0.0   ;;  %v431_v25 = vrot.slane %v426_v44, 4  ;;  %v869_v63 = vld [vmem:[%s4055_s4 + $0x8] sm:$0xff] }
  0x37   : > { %v491_v0 = vrot.slane %v472_v59, 4  ;;  %v436_v8 = vsel %vm269_vm0, %v435_v2, %v418_v50  ;;  %v490_v9 = vsel %vm269_vm0, %v489_v3, %v472_v59  ;;  %v530_v13 = vperm.slane %v3011_v12, %v3109_v11  ;;  %2826 = vmatpush.msra.mxu1 %v869_v63  ;;  %2827 = vmatpush.msra.mxu2 %v869_v63 }
  0x38   : > { %v488_v1 = vsel %vm269_vm0, %v480_v58, %v487_v62  ;;  %v2905_v10 = vpack.i.bf16 %v436_v8, %v490_v9  ;;  %v485_v26 = vrot.slane %v480_v58, 4  ;;  %v432_v31 = vsel %vm269_vm0, %v431_v25, %v3170_v40  ;;  %2828 = vmatpush.msra.mxu3 %v869_v63 }
  0x39   : > { %v2900_v5 = vpack.i.bf16 %v434_v61, %v488_v1  ;;  %v492_v6 = vsel %vm269_vm0, %v484_v60, %v491_v0  ;;  %v531_v14 = vrot.slane %v530_v13, 4  ;;  %v868_v1 = vld [vmem:[%s4055_s4] sm:$0xff] }
  0x3a   : > { %v2910_v7 = vpack.i.bf16 %v438_v4, %v492_v6  ;;  %v486_v30 = vsel %vm269_vm0, %v485_v26, %v468_v54  ;;  %2829 = vmatpush.msra.mxu1 %v868_v1  ;;  %2830 = vmatpush.msra.mxu2 %v868_v1 }
  0x3b   : > { %2901 = vrot.lane.b32.xlu0 %v2900_v5, %s3008_s12  ;;  %v532_v15 = vsel %vm269_vm0, %v531_v14, %v530_v13  ;;  %v533_v20 = vsel %vm269_vm0, %v530_v13, %v531_v14  ;;  %2831 = vmatpush.msra.mxu3 %v868_v1 }
  0x3c   : > { %2911 = vrot.lane.b32.xlu1 %v2910_v7, %s3009_s13  ;;  %v537_v17 = vperm.slane %v532_v15, %v3111_v16  ;;  %v541_v21 = vperm.slane %v533_v20, %v3111_v16 }
  0x3e   : > { %v542_v18 = vrot.slane %v537_v17, 4  ;;  %v545_v23 = vrot.slane %v541_v21, 4 }
  0x40   : > { %v544_v19 = vsel %vm269_vm0, %v537_v17, %v542_v18  ;;  %v546_v24 = vsel %vm269_vm0, %v545_v23, %v541_v21  ;;  %v547_v34 = vsel %vm269_vm0, %v541_v21, %v545_v23  ;;  %v543_v49 = vsel %vm269_vm0, %v542_v18, %v537_v17 }
  0x41   : > { %553 = vrot.lane.b32.xlu2 %v546_v24, %s3010_s14 }
  0x43   : > { %2906 = vrot.lane.b32.xlu0 %v2905_v10, %s3010_s14 }
  0x44   : > { %549 = vrot.lane.b32.xlu1 %v544_v19, %s3008_s12 }
  0x49   : > { %557 = vrot.lane.b32.xlu2 %v547_v34, %s3009_s13 }
  0x9b   : > { %v554_v48 = vpop.permute.xlu2 %553 }
  0xa3   : > { %v558_v52 = vpop.permute.xlu2 %557 }
  0xad   : > { %v2902_v22 = vpop.permute.xlu0 %2901 }
  0xae   : > { %v2912_v27 = vpop.permute.xlu1 %2911  ;;  %v2904_v28 = vunpack.i.h.bf16 %v2902_v22  ;;  %v2903_v29 = vunpack.i.l.bf16 %v2902_v22 }
  0xaf   : > { %v2913_v33 = vunpack.i.l.bf16 %v2912_v27  ;;  %v2914_v37 = vunpack.i.h.bf16 %v2912_v27 }
  0xb0   : > { %v519_v38 = vsel %vm517_vm1, %v486_v30, %v2903_v29  ;;  %v518_v39 = vsel %vm517_vm1, %v432_v31, %v2904_v28 }
  0xb5   : > { %v2907_v32 = vpop.permute.xlu0 %2906 }
  0xb6   : > { %v2909_v35 = vunpack.i.h.bf16 %v2907_v32  ;;  %v2908_v36 = vunpack.i.l.bf16 %v2907_v32  ;;  %v550_v50 = vpop.permute.xlu1 %549 }
  0xb7   : > { %v560_v51 = vsel %vm517_vm1, %v543_v49, %v550_v50 }
  0xb8   : > { %v522_v41 = vsel %vm520_vm2, %v519_v38, %v2908_v36  ;;  %v521_v42 = vsel %vm520_vm2, %v518_v39, %v2909_v35  ;;  %v561_v53 = vsel %vm520_vm2, %v560_v51, %v554_v48 }
  0xb9   : > { %v525_v40 = vsel %vm523_vm3, %v522_v41, %v2913_v33  ;;  %v524_v44 = vsel %vm523_vm3, %v521_v42, %v2914_v37  ;;  %v562_v54 = vsel %vm523_vm3, %v561_v53, %v558_v52 }
  0xba   : > { %589 = vmatpush.msra.mxu0 %v525_v40 }
  0xbc   : > { %590 = vmatpush.msra.mxu0 %v524_v44 }
  0xbd   : > { %2775 = vmatmul.msk.f32.vlgmr.msra.gmra.mxu0 %vm517_vm1, %v381_v43 }
  0xbe   : > { %1003 = vmatpush.msrb.mxu0 %v869_v63 }
  0xc0   : > { %1004 = vmatpush.msrb.mxu0 %v868_v1 }
  0xc5   : > { %2776 = vmatmul.msk.f32.gmra.mxu0 %vm517_vm1, %v382_v45 }
  0xcd   : > { %2777 = vmatmul.msk.f32.gmra.mxu0 %vm517_vm1, %v383_v46 }
  0xd5   : > { %2778 = vmatmul.msk.f32.gmra.mxu0 %vm517_vm1, %v384_v47 }
 0x13a   : > { %v592_v55 = vpop.f32.mrf.mxu0 }
 0x13b   : > { %v593_v56 = vadd.f32 %v592_v55, %v562_v54 }
 0x13d   : > { %620 = vrot.lane.b32.xlu2 %v593_v56, %s3012_s8  ;;  %608 = vrot.lane.b32.xlu1 %v593_v56, %s3013_s9  ;;  %v646_v3 = vrot.slane %v593_v56, 4 }
 0x13e   : > { %632 = vrot.lane.b32.xlu0 %v593_v56, %s3014_s10 }
 0x142   : > { %v595_v57 = vpop.f32.mrf.mxu0 }
 0x143   : > { %v596_v58 = vadd.f32 %v595_v57, %v562_v54 }
 0x145   : > { %622 = vrot.lane.b32.xlu2 %v596_v58, %s3012_s8  ;;  %610 = vrot.lane.b32.xlu1 %v596_v58, %s3013_s9  ;;  %v702_v12 = vrot.slane %v596_v58, 4 }
 0x146   : > { %634 = vrot.lane.b32.xlu0 %v596_v58, %s3014_s10 }
 0x14a   : > { %v598_v59 = vpop.f32.mrf.mxu0 }
 0x14b   : > { %v3237_v60 = vadd.f32 %v598_v59, %v562_v54 }
 0x14d   : > { %624 = vrot.lane.b32.xlu2 %v3237_v60, %s3012_s8  ;;  %612 = vrot.lane.b32.xlu1 %v3237_v60, %s3013_s9  ;;  %v758_v33 = vrot.slane %v3237_v60, 4 }
 0x14e   : > { %636 = vrot.lane.b32.xlu0 %v3237_v60, %s3014_s10 }
 0x152   : > { %v601_v61 = vpop.f32.mrf.mxu0 }
 0x153   : > { %v3243_v62 = vadd.f32 %v601_v61, %v562_v54 }
 0x155   : > { %614 = vrot.lane.b32.xlu2 %v3243_v62, %s3013_s9  ;;  %638 = vrot.lane.b32.xlu1 %v3243_v62, %s3014_s10  ;;  %s2825_s9 = sshll.u32 %s2996_s21, 8 }
 0x156   : > { %626 = vrot.lane.b32.xlu0 %v3243_v62, %s3012_s8  ;;  %s2674_s11 = scalar_lea.hbm %s4056_s5, %s2825_s9 }
 0x157   : > { %s2677_s13 = sshll.u32 %s2674_s11, 4  ;;  %s2678_s13 = int_to_ptr.hbm [resolvable:$true] %s2677_s13 }
 0x158   : > { %s2940_s17 = sshra.s32 %s2678_s13, 4  ;;  %s2941_s17 = int_to_ptr.hbm [resolvable:$true] %s2940_s17 }
 0x159   : > { %s2942_s24 = scalar_lea.hbm %s2941_s17, 256  ;;  %p2947_p1 = scmp.lt.s32.totalorder %s2941_s17, %s4056_s5 }
 0x15a   : > { %p2943_p12 = scmp.ne.s32.totalorder %s2941_s17, %s2942_s24  ;;  %p2948_p2 = scmp.lt.s32.totalorder %s2946_s29, %s2942_s24 }
 0x15c   : > { %p2944_p13 = pnand %p2943_p12, %p3089_p4  ;;  %p2949_p3 = por %p2948_p2, %p2947_p1 }
 0x15e   : > { %p2945_p0 = pneg %p2944_p13 }
 0x160   : > { %p2950_p5 = pnand %p2949_p3, %p2945_p0 }
 0x197   : > { %v621_v0 = vpop.permute.xlu2 %620 }
 0x198   : > { %v644_v2 = vrot.slane %v621_v0, 4  ;;  %v647_v4 = vsel %vm269_vm0, %v621_v0, %v646_v3 }
 0x199   : > { %v655_v7 = vperm.slane %v647_v4, %v3109_v11 }
 0x19a   : > { %v645_v6 = vsel %vm269_vm0, %v644_v2, %v593_v56 }
 0x19b   : > { %v651_v10 = vperm.slane %v645_v6, %v3109_v11  ;;  %v682_v19 = vrot.slane %v655_v7, 4 }
 0x19d   : > { %v670_v23 = vrot.slane %v651_v10, 4 }
 0x19f   : > { %v623_v5 = vpop.permute.xlu2 %622 }
 0x1a0   : > { %v700_v8 = vrot.slane %v623_v5, 4  ;;  %v703_v17 = vsel %vm269_vm0, %v623_v5, %v702_v12 }
 0x1a1   : > { %v711_v25 = vperm.slane %v703_v17, %v3109_v11 }
 0x1a2   : > { %v701_v20 = vsel %vm269_vm0, %v700_v8, %v596_v58 }
 0x1a3   : > { %v707_v28 = vperm.slane %v701_v20, %v3109_v11  ;;  %v738_v47 = vrot.slane %v711_v25, 4 }
 0x1a5   : > { %v726_v46 = vrot.slane %v707_v28, 4 }
 0x1a7   : > { %v625_v29 = vpop.permute.xlu2 %624 }
 0x1a8   : > { %v756_v40 = vrot.slane %v625_v29, 4  ;;  %v759_v54 = vsel %vm269_vm0, %v625_v29, %v758_v33 }
 0x1a9   : > { %v767_v3 = vperm.slane %v759_v54, %v3109_v11 }
 0x1aa   : > { %v757_v58 = vsel %vm269_vm0, %v756_v40, %v3237_v60 }
 0x1ab   : > { %v763_v6 = vperm.slane %v757_v58, %v3109_v11 }
 0x1af   : > { %v609_v9 = vpop.permute.xlu1 %608 }
 0x1b0   : > { %v658_v13 = vrot.slane %v609_v9, 4  ;;  %v633_v14 = vpop.permute.xlu0 %632 }
 0x1b1   : > { %v656_v15 = vrot.slane %v633_v14, 4 }
 0x1b2   : > { %v659_v18 = vsel %vm269_vm0, %v633_v14, %v658_v13 }
 0x1b3   : > { %v657_v21 = vsel %vm269_vm0, %v656_v15, %v609_v9  ;;  %v667_v22 = vperm.slane %v659_v18, %v3109_v11 }
 0x1b4   : > { %v663_v24 = vperm.slane %v657_v21, %v3109_v11 }
 0x1b5   : > { %v680_v26 = vrot.slane %v667_v22, 4  ;;  %v683_v27 = vsel %vm269_vm0, %v667_v22, %v682_v19 }
 0x1b6   : > { %v668_v30 = vrot.slane %v663_v24, 4  ;;  %v671_v31 = vsel %vm269_vm0, %v663_v24, %v670_v23  ;;  %v691_v32 = vperm.slane %v683_v27, %v3111_v16  ;;  %v782_v23 = vrot.slane %v763_v6, 4 }
 0x1b7   : > { %v679_v34 = vperm.slane %v671_v31, %v3111_v16  ;;  %v681_v35 = vsel %vm269_vm0, %v680_v26, %v655_v7  ;;  %v611_v36 = vpop.permute.xlu1 %610  ;;  %v794_v24 = vrot.slane %v767_v3, 4  ;;  %v814_v27 = vrot.slane %v3243_v62, 4 }
 0x1b8   : > { %v669_v37 = vsel %vm269_vm0, %v668_v30, %v651_v10  ;;  %v687_v38 = vperm.slane %v681_v35, %v3111_v16  ;;  %v698_v39 = vrot.slane %v691_v32, 4  ;;  %914 = vst [vmem:[#allocation1 + $0x30] ss:$2 sm:$0xff] %v691_v32  ;;  %v714_v41 = vrot.slane %v611_v36, 4  ;;  %v635_v42 = vpop.permute.xlu0 %634 }
 0x1b9   : > { %v675_v43 = vperm.slane %v669_v37, %v3111_v16  ;;  %v694_v44 = vrot.slane %v679_v34, 4  ;;  %906 = vst [vmem:[#allocation1 + $0x10] ss:$2 sm:$0xff] %v679_v34  ;;  %v712_v45 = vrot.slane %v635_v42, 4 }
 0x1ba   : > { %v696_v48 = vrot.slane %v687_v38, 4  ;;  %910 = vst [vmem:[#allocation1 + $0x20] ss:$2 sm:$0xff] %v687_v38  ;;  %v715_v49 = vsel %vm269_vm0, %v635_v42, %v714_v41  ;;  %v699_v56 = vsel %vm269_vm0, 0.0, %v698_v39 }
 0x1bb   : > { %v692_v50 = vrot.slane %v675_v43, 4  ;;  %v695_v51 = vsel %vm269_vm0, 0.0, %v694_v44  ;;  %902 = vst [vmem:[#allocation1] ss:$2 sm:$0xff] %v675_v43  ;;  %v713_v52 = vsel %vm269_vm0, %v712_v45, %v611_v36  ;;  %v723_v53 = vperm.slane %v715_v49, %v3109_v11 }
 0x1bc   : > { %v697_v55 = vsel %vm269_vm0, 0.0, %v696_v48  ;;  %908 = vst [vmem:[#allocation1 + $0x11] ss:$2 sm:$0xff] %v695_v51  ;;  %v719_v57 = vperm.slane %v713_v52, %v3109_v11 }
 0x1bd   : > { %v693_v59 = vsel %vm269_vm0, 0.0, %v692_v50  ;;  %912 = vst [vmem:[#allocation1 + $0x21] ss:$2 sm:$0xff] %v697_v55  ;;  %v736_v61 = vrot.slane %v723_v53, 4  ;;  %v739_v63 = vsel %vm269_vm0, %v723_v53, %v738_v47 }
 0x1be   : > { %904 = vst [vmem:[#allocation1 + $0x1] ss:$2 sm:$0xff] %v693_v59  ;;  %v724_v0 = vrot.slane %v719_v57, 4  ;;  %v727_v1 = vsel %vm269_vm0, %v719_v57, %v726_v46  ;;  %v747_v2 = vperm.slane %v739_v63, %v3111_v16 }
 0x1bf   : > { %916 = vst [vmem:[#allocation1 + $0x31] ss:$2 sm:$0xff] %v699_v56  ;;  %v735_v4 = vperm.slane %v727_v1, %v3111_v16  ;;  %v737_v5 = vsel %vm269_vm0, %v736_v61, %v711_v25  ;;  %v613_v60 = vpop.permute.xlu1 %612  ;;  %v615_v25 = vpop.permute.xlu2 %614 }
 0x1c0   : > { %v725_v7 = vsel %vm269_vm0, %v724_v0, %v707_v28  ;;  %v743_v8 = vperm.slane %v737_v5, %v3111_v16  ;;  %v770_v9 = vrot.slane %v613_v60, 4  ;;  %v637_v10 = vpop.permute.xlu0 %636  ;;  %v754_v13 = vrot.slane %v747_v2, 4 }
 0x1c1   : > { %v731_v12 = vperm.slane %v725_v7, %v3111_v16  ;;  %v768_v14 = vrot.slane %v637_v10, 4  ;;  %v750_v15 = vrot.slane %v735_v4, 4  ;;  %v826_v36 = vrot.slane %v615_v25, 4 }
 0x1c2   : > { %v771_v17 = vsel %vm269_vm0, %v637_v10, %v770_v9  ;;  %v752_v19 = vrot.slane %v743_v8, 4  ;;  %v755_v30 = vsel %vm269_vm0, 0.0, %v754_v13 }
 0x1c3   : > { %v748_v18 = vrot.slane %v731_v12, 4  ;;  %v769_v20 = vsel %vm269_vm0, %v768_v14, %v613_v60  ;;  %v779_v21 = vperm.slane %v771_v17, %v3109_v11  ;;  %v918_v22 = vld.sshfl [vmem:[#allocation1 + $0x10] sm:$0xff pattern:$0x75316420]  ;;  %v751_v37 = vsel %vm269_vm0, 0.0, %v750_v15 }
 0x1c4   : > { %v775_v26 = vperm.slane %v769_v20, %v3109_v11  ;;  %923 = vst [vmem:[#allocation1 + $0x10] ss:$2 sm:$0xff] %v735_v4  ;;  %v753_v38 = vsel %vm269_vm0, 0.0, %v752_v19  ;;  %v919_v45 = vld.sshfl [vmem:[#allocation1 + $0x20] sm:$0xff pattern:$0x75316420] }
 0x1c5   : > { %v917_v28 = vld.sshfl [vmem:[#allocation1] sm:$0xff pattern:$0x75316420]  ;;  %v749_v29 = vsel %vm269_vm0, 0.0, %v748_v18  ;;  %v792_v31 = vrot.slane %v779_v21, 4  ;;  %v795_v34 = vsel %vm269_vm0, %v779_v21, %v794_v24 }
 0x1c6   : > { %921 = vst [vmem:[#allocation1] ss:$2 sm:$0xff] %v731_v12  ;;  %v780_v32 = vrot.slane %v775_v26, 4  ;;  %v783_v33 = vsel %vm269_vm0, %v775_v26, %v782_v23  ;;  %v920_v35 = vld.sshfl [vmem:[#allocation1 + $0x30] sm:$0xff pattern:$0x75316420]  ;;  %2779 = vmatmul.msk.f32.vlgmr.msrb.gmra.mxu0 %vm517_vm1, %v917_v28  ;;  %v803_v47 = vperm.slane %v795_v34, %v3111_v16 }
 0x1c7   : > { %922 = vst [vmem:[#allocation1 + $0x1] ss:$2 sm:$0xff] %v749_v29  ;;  %v793_v39 = vsel %vm269_vm0, %v792_v31, %v767_v3  ;;  %2782 = vmatmul.msk.f32.vlgmr.msra.gmra.mxu1 %vm517_vm1, %v920_v35  ;;  %v639_v41 = vpop.permute.xlu1 %638  ;;  %v791_v40 = vperm.slane %v783_v33, %v3111_v16 }
 0x1c8   : > { %v781_v42 = vsel %vm269_vm0, %v780_v32, %v763_v6  ;;  %927 = vst [vmem:[#allocation1 + $0x30] ss:$2 sm:$0xff] %v747_v2  ;;  %v824_v43 = vrot.slane %v639_v41, 4  ;;  %v627_v44 = vpop.permute.xlu0 %626  ;;  %v827_v48 = vsel %vm269_vm0, %v639_v41, %v826_v36  ;;  %v799_v50 = vperm.slane %v793_v39, %v3111_v16 }
 0x1c9   : > { %v787_v46 = vperm.slane %v781_v42, %v3111_v16  ;;  %928 = vst [vmem:[#allocation1 + $0x31] ss:$2 sm:$0xff] %v755_v30  ;;  %v812_v49 = vrot.slane %v627_v44, 4  ;;  %v835_v52 = vperm.slane %v827_v48, %v3109_v11  ;;  %v815_v56 = vsel %vm269_vm0, %v627_v44, %v814_v27 }
 0x1ca   : > { %v825_v51 = vsel %vm269_vm0, %v824_v43, %v615_v25  ;;  %924 = vst [vmem:[#allocation1 + $0x11] ss:$2 sm:$0xff] %v751_v37  ;;  %v806_v57 = vrot.slane %v791_v40, 4  ;;  %v823_v59 = vperm.slane %v815_v56, %v3109_v11  ;;  %v810_v63 = vrot.slane %v803_v47, 4 }
 0x1cb   : > { %v804_v53 = vrot.slane %v787_v46, 4  ;;  %v831_v54 = vperm.slane %v825_v51, %v3109_v11  ;;  %v813_v55 = vsel %vm269_vm0, %v812_v49, %v3243_v62  ;;  %925 = vst [vmem:[#allocation1 + $0x20] ss:$2 sm:$0xff] %v743_v8  ;;  %v808_v4 = vrot.slane %v799_v50, 4 }
 0x1cc   : > { %v819_v58 = vperm.slane %v813_v55, %v3109_v11  ;;  %926 = vst [vmem:[#allocation1 + $0x21] ss:$2 sm:$0xff] %v753_v38  ;;  %v850_v3 = vrot.slane %v823_v59, 4  ;;  %v848_v62 = vrot.slane %v835_v52, 4  ;;  %v807_v7 = vsel %vm269_vm0, 0.0, %v806_v57 }
 0x1cd   : > { %v805_v61 = vsel %vm269_vm0, 0.0, %v804_v53  ;;  %v836_v0 = vrot.slane %v831_v54, 4  ;;  %v811_v9 = vsel %vm269_vm0, 0.0, %v810_v63  ;;  %v809_v15 = vsel %vm269_vm0, 0.0, %v808_v4 }
 0x1ce   : > { %v929_v1 = vld.sshfl [vmem:[#allocation1] sm:$0xff pattern:$0x75316420]  ;;  %v838_v2 = vrot.slane %v819_v58, 4  ;;  %2780 = vmatmul.msk.f32.gmra.mxu0 %vm517_vm1, %v918_v22  ;;  %v851_v13 = vsel %vm269_vm0, %v835_v52, %v850_v3  ;;  %v849_v17 = vsel %vm269_vm0, %v848_v62, %v823_v59 }
 0x1cf   : > { %933 = vst [vmem:[#allocation1] ss:$2 sm:$0xff] %v787_v46  ;;  %v837_v5 = vsel %vm269_vm0, %v836_v0, %v819_v58  ;;  %2783 = vmatmul.msk.f32.gmra.mxu1 %vm517_vm1, %v929_v1  ;;  %v859_v19 = vperm.slane %v851_v13, %v3111_v16  ;;  %v855_v21 = vperm.slane %v849_v17, %v3111_v16 }
 0x1d0   : > { %934 = vst [vmem:[#allocation1 + $0x1] ss:$2 sm:$0xff] %v805_v61  ;;  %v839_v60 = vsel %vm269_vm0, %v831_v54, %v838_v2  ;;  %v843_v6 = vperm.slane %v837_v5, %v3111_v16  ;;  %v932_v8 = vld.sshfl [vmem:[#allocation1 + $0x30] sm:$0xff pattern:$0x75316420] }
 0x1d1   : > { %v847_v10 = vperm.slane %v839_v60, %v3111_v16  ;;  %v930_v12 = vld.sshfl [vmem:[#allocation1 + $0x10] sm:$0xff pattern:$0x75316420]  ;;  %939 = vst [vmem:[#allocation1 + $0x30] ss:$2 sm:$0xff] %v803_v47  ;;  %v866_v24 = vrot.slane %v859_v19, 4 }
 0x1d2   : > { %v860_v14 = vrot.slane %v843_v6, 4  ;;  %935 = vst [vmem:[#allocation1 + $0x10] ss:$2 sm:$0xff] %v791_v40  ;;  %v864_v26 = vrot.slane %v855_v21, 4 }
 0x1d3   : > { %936 = vst [vmem:[#allocation1 + $0x11] ss:$2 sm:$0xff] %v807_v7  ;;  %v931_v18 = vld.sshfl [vmem:[#allocation1 + $0x20] sm:$0xff pattern:$0x75316420]  ;;  %v862_v20 = vrot.slane %v847_v10, 4 }
 0x1d4   : > { %940 = vst [vmem:[#allocation1 + $0x31] ss:$2 sm:$0xff] %v811_v9  ;;  %v861_v22 = vsel %vm269_vm0, 0.0, %v860_v14  ;;  %v867_v30 = vsel %vm269_vm0, 0.0, %v866_v24  ;;  %v865_v31 = vsel %vm269_vm0, 0.0, %v864_v26 }
 0x1d5   : > { %937 = vst [vmem:[#allocation1 + $0x20] ss:$2 sm:$0xff] %v799_v50  ;;  %v863_v25 = vsel %vm269_vm0, 0.0, %v862_v20 }
 0x1d6   : > { %2781 = vmatmul.msk.f32.gmra.mxu0 %vm517_vm1, %v919_v45  ;;  %938 = vst [vmem:[#allocation1 + $0x21] ss:$2 sm:$0xff] %v809_v15 }
 0x1d7   : > { %v941_v23 = vld.sshfl [vmem:[#allocation1] sm:$0xff pattern:$0x75316420]  ;;  %2784 = vmatmul.msk.f32.gmra.mxu1 %vm517_vm1, %v930_v12 }
 0x1d8   : > { %945 = vst [vmem:[#allocation1] ss:$2 sm:$0xff] %v843_v6 }
 0x1d9   : > { %946 = vst [vmem:[#allocation1 + $0x1] ss:$2 sm:$0xff] %v861_v22 }
 0x1da   : > { %v942_v27 = vld.sshfl [vmem:[#allocation1 + $0x10] sm:$0xff pattern:$0x75316420] }
 0x1db   : > { %947 = vst [vmem:[#allocation1 + $0x10] ss:$2 sm:$0xff] %v847_v10  ;;  %v944_v28 = vld.sshfl [vmem:[#allocation1 + $0x30] sm:$0xff pattern:$0x75316420] }
 0x1dc   : > { %948 = vst [vmem:[#allocation1 + $0x11] ss:$2 sm:$0xff] %v863_v25 }
 0x1dd   : > { %v943_v29 = vld.sshfl [vmem:[#allocation1 + $0x20] sm:$0xff pattern:$0x75316420]  ;;  %951 = vst [vmem:[#allocation1 + $0x30] ss:$2 sm:$0xff] %v859_v19 }
 0x1de   : > { %949 = vst [vmem:[#allocation1 + $0x20] ss:$2 sm:$0xff] %v855_v21  ;;  %2789 = vmatmul.msk.f32.vlgmr.msra.gmra.mxu2 %vm517_vm1, %v943_v29 }
 0x1df   : > { %950 = vst [vmem:[#allocation1 + $0x21] ss:$2 sm:$0xff] %v865_v31  ;;  %2785 = vmatmul.msk.f32.gmra.mxu1 %vm517_vm1, %v931_v18 }
 0x1e0   : > { %952 = vst [vmem:[#allocation1 + $0x31] ss:$2 sm:$0xff] %v867_v30  ;;  %v953_v34 = vld.sshfl [vmem:[#allocation1] sm:$0xff pattern:$0x75316420] }
 0x1e3   : > { %v954_v32 = vld.sshfl [vmem:[#allocation1 + $0x10] sm:$0xff pattern:$0x75316420] }
 0x1e4   : > { %2792 = vmatmul.msk.f32.vlgmr.msra.gmra.mxu3 %vm517_vm1, %v954_v32 }
 0x1e6   : > { %2790 = vmatmul.msk.f32.gmra.mxu2 %vm517_vm1, %v944_v28  ;;  %v955_v33 = vld.sshfl [vmem:[#allocation1 + $0x20] sm:$0xff pattern:$0x75316420] }
 0x1e7   : > { %2786 = vmatmul.msk.f32.gmra.mxu1 %vm517_vm1, %v932_v8  ;;  %v956_v35 = vld.sshfl [vmem:[#allocation1 + $0x30] sm:$0xff pattern:$0x75316420] }
 0x1ec   : > { %2793 = vmatmul.msk.f32.gmra.mxu3 %vm517_vm1, %v955_v33 }
 0x1ee   : > { %2791 = vmatmul.msk.f32.gmra.mxu2 %vm517_vm1, %v953_v34 }
 0x1ef   : > { %2787 = vmatmul.msk.f32.gmra.mxu1 %vm517_vm1, %v941_v23 }
 0x1f4   : > { %2794 = vmatmul.msk.f32.gmra.mxu3 %vm517_vm1, %v956_v35 }
 0x1f7   : > { %2788 = vmatmul.msk.f32.gmra.mxu1 %vm517_vm1, %v942_v27 }
 0x243   : > { %v1006_v36 = vpop.f32.mrf.mxu0 }
 0x244   : > { %v1015_v37 = vpop.f32.mrf.mxu1  ;;  %v1070_v38 = vrot.slane %v1006_v36, 4 }
 0x245   : > { %v1130_v49 = vrot.slane %v1015_v37, 4 }
 0x24b   : > { %v1009_v39 = vpop.f32.mrf.mxu0 }
 0x24c   : > { %v1102_v41 = vrot.slane %v1009_v39, 4  ;;  %v1109_v42 = vsel %vm269_vm0, %v1009_v39, %v1070_v38  ;;  %v1018_v48 = vpop.f32.mrf.mxu1 }
 0x24d   : > { %v1113_v40 = vperm.slane %v1109_v42, %v3109_v11  ;;  %v1074_v27 = vrot.slane %v1018_v48, 4 }
 0x24e   : > { %v1103_v43 = vsel %vm269_vm0, %v1102_v41, %v1006_v36 }
 0x24f   : > { %v1107_v44 = vperm.slane %v1103_v43, %v3109_v11  ;;  %v1114_v45 = vrot.slane %v1113_v40, 4 }
 0x251   : > { %v1115_v46 = vsel %vm269_vm0, %v1114_v45, %v1107_v44  ;;  %v1116_v47 = vrot.slane %v1107_v44, 4 }
 0x252   : > { %v1121_v50 = vperm.slane %v1115_v46, %v3111_v16 }
 0x253   : > { %v1117_v51 = vsel %vm269_vm0, %v1113_v40, %v1116_v47  ;;  %v1012_v52 = vpop.f32.mrf.mxu0 }
 0x254   : > { %v1125_v53 = vperm.slane %v1117_v51, %v3111_v16  ;;  %v1072_v54 = vrot.slane %v1012_v52, 4  ;;  %v1131_v55 = vsel %vm269_vm0, %v1130_v49, %v1012_v52  ;;  %v1126_v57 = vrot.slane %v1121_v50, 4  ;;  %v1021_v7 = vpop.f32.mrf.mxu1 }
 0x255   : > { %v1135_v56 = vperm.slane %v1131_v55, %v3109_v11  ;;  %v1158_v14 = vrot.slane %v1021_v7, 4  ;;  %v1165_v29 = vsel %vm269_vm0, %v1021_v7, %v1074_v27 }
 0x256   : > { %v1128_v58 = vrot.slane %v1125_v53, 4  ;;  %v1137_v59 = vsel %vm269_vm0, %v1015_v37, %v1072_v54  ;;  %v1127_v4 = vsel %vm269_vm0, 0.0, %v1126_v57  ;;  %v1169_v34 = vperm.slane %v1165_v29, %v3109_v11 }
 0x257   : > { %v1141_v61 = vperm.slane %v1137_v59, %v3109_v11  ;;  %v1144_v63 = vrot.slane %v1135_v56, 4  ;;  %v1159_v20 = vsel %vm269_vm0, %v1158_v14, %v1018_v48 }
 0x258   : > { %v1129_v0 = vsel %vm269_vm0, 0.0, %v1128_v58  ;;  %v1383_v5 = vsel %vm269_vm0, %v1128_v58, %v1121_v50  ;;  %v1163_v26 = vperm.slane %v1159_v20, %v3109_v11  ;;  %v1170_v41 = vrot.slane %v1169_v34, 4 }
 0x259   : > { %v1388_v1 = vrot.slane %v1129_v0, 4  ;;  %v1142_v2 = vrot.slane %v1141_v61, 4  ;;  %v1145_v3 = vsel %vm269_vm0, %v1141_v61, %v1144_v63  ;;  %v1387_v12 = vperm.slane %v1383_v5, %v3109_v11 }
 0x25a   : > { %v1153_v62 = vperm.slane %v1145_v3, %v3111_v16  ;;  %v1172_v31 = vrot.slane %v1163_v26, 4  ;;  %v1171_v45 = vsel %vm269_vm0, %v1170_v41, %v1163_v26 }
 0x25b   : > { %v1389_v60 = vsel %vm269_vm0, %v1388_v1, %v1127_v4  ;;  %v1143_v6 = vsel %vm269_vm0, %v1142_v2, %v1135_v56  ;;  %v1396_v24 = vrot.slane %v1387_v12, 4  ;;  %v1177_v51 = vperm.slane %v1171_v45, %v3111_v16 }
 0x25c   : > { %v1393_v8 = vperm.slane %v1389_v60, %v3109_v11  ;;  %v1149_v9 = vperm.slane %v1143_v6, %v3111_v16  ;;  %v1156_v10 = vrot.slane %v1153_v62, 4  ;;  %v1024_v32 = vpop.f32.mrf.mxu1  ;;  %v1173_v38 = vsel %vm269_vm0, %v1169_v34, %v1172_v31 }
 0x25d   : > { %v1181_v40 = vperm.slane %v1173_v38, %v3111_v16  ;;  %v1182_v55 = vrot.slane %v1177_v51, 4  ;;  %v1076_v1 = vrot.slane %v1024_v32, 4 }
 0x25e   : > { %v1394_v13 = vrot.slane %v1393_v8, 4  ;;  %v1154_v17 = vrot.slane %v1149_v9, 4  ;;  %v1157_v18 = vsel %vm269_vm0, 0.0, %v1156_v10  ;;  %v1397_v30 = vsel %vm269_vm0, %v1393_v8, %v1396_v24 }
 0x25f   : > { %v1415_v22 = vrot.slane %v1157_v18, 4  ;;  %v1405_v35 = vperm.slane %v1397_v30, %v3111_v16  ;;  %v1410_v37 = vsel %vm269_vm0, %v1156_v10, %v1149_v9  ;;  %v1184_v47 = vrot.slane %v1181_v40, 4 }
 0x260   : > { %v1395_v15 = vsel %vm269_vm0, %v1394_v13, %v1387_v12  ;;  %v1155_v23 = vsel %vm269_vm0, 0.0, %v1154_v17  ;;  %v1414_v42 = vperm.slane %v1410_v37, %v3109_v11  ;;  %v1183_v0 = vsel %vm269_vm0, 0.0, %v1182_v55 }
 0x261   : > { %v3380_v19 = vperm.slane %v1395_v15, %v3111_v16  ;;  %v1416_v28 = vsel %vm269_vm0, %v1415_v22, %v1155_v23  ;;  %v1408_v43 = vrot.slane %v1405_v35, 4  ;;  %v1185_v53 = vsel %vm269_vm0, 0.0, %v1184_v47  ;;  %v1036_v40 = vpop.f32.mrf.mxu2 }
 0x262   : > { %v1420_v33 = vperm.slane %v1416_v28, %v3109_v11  ;;  %v1442_v57 = vrot.slane %v1185_v53, 4  ;;  %v1423_v59 = vrot.slane %v1414_v42, 4  ;;  %v1437_v9 = vsel %vm269_vm0, %v1184_v47, %v1177_v51 }
 0x263   : > { %v1406_v21 = vrot.slane %v3380_v19, 4  ;;  %v1409_v48 = vsel %vm269_vm0, 0.0, %v1408_v43  ;;  %v1441_v14 = vperm.slane %v1437_v9, %v3109_v11 }
 0x264   : > { %v1421_v39 = vrot.slane %v1420_v33, 4  ;;  %v1027_v46 = vpop.f32.mrf.mxu1  ;;  %v1443_v2 = vsel %vm269_vm0, %v1442_v57, %v1183_v0  ;;  %v1424_v4 = vsel %vm269_vm0, %v1420_v33, %v1423_v59 }
 0x265   : > { %v1407_v25 = vsel %vm269_vm0, 0.0, %v1406_v21  ;;  %v1186_v52 = vrot.slane %v1027_v46, 4  ;;  %v1193_v3 = vsel %vm269_vm0, %v1027_v46, %v1076_v1  ;;  %v1447_v60 = vperm.slane %v1443_v2, %v3109_v11 }
 0x266   : > { %1600 = vst [vmem:[#allocation1] ss:$2 sm:$0xff] %v1407_v25  ;;  %v1422_v44 = vsel %vm269_vm0, %v1421_v39, %v1414_v42  ;;  %v1197_v6 = vperm.slane %v1193_v3, %v3109_v11  ;;  %v1432_v7 = vperm.slane %v1424_v4, %v3111_v16  ;;  %v1450_v34 = vrot.slane %v1441_v14, 4 }
 0x267   : > { %v3402_v50 = vperm.slane %v1422_v44, %v3111_v16  ;;  %v1187_v56 = vsel %vm269_vm0, %v1186_v52, %v1024_v32  ;;  %v1448_v12 = vrot.slane %v1447_v60, 4 }
 0x268   : > { %v1191_v63 = vperm.slane %v1187_v56, %v3109_v11  ;;  %v1198_v13 = vrot.slane %v1197_v6, 4  ;;  %v1435_v17 = vrot.slane %v1432_v7, 4  ;;  %v1451_v42 = vsel %vm269_vm0, %v1447_v60, %v1450_v34  ;;  %v1045_v34 = vpop.f32.mrf.mxu3 }
 0x269   : > { %v1433_v54 = vrot.slane %v3402_v50, 4  ;;  %v1449_v18 = vsel %vm269_vm0, %v1448_v12, %v1441_v14  ;;  %v1459_v46 = vperm.slane %v1451_v42, %v3111_v16  ;;  %v1039_v57 = vpop.f32.mrf.mxu2  ;;  %v1270_v42 = vrot.slane %v1045_v34, 4 }
 0x26a   : > { %v1200_v62 = vrot.slane %v1191_v63, 4  ;;  %v1199_v20 = vsel %vm269_vm0, %v1198_v13, %v1191_v63  ;;  %v1436_v23 = vsel %vm269_vm0, 0.0, %v1435_v17  ;;  %v3428_v25 = vperm.slane %v1449_v18, %v3111_v16 }
 0x26b   : > { %v1434_v61 = vsel %vm269_vm0, 0.0, %v1433_v54  ;;  %v1205_v26 = vperm.slane %v1199_v20, %v3111_v16  ;;  %v1462_v55 = vrot.slane %v1459_v46, 4  ;;  %v1242_v1 = vrot.slane %v1039_v57, 4 }
 0x26c   : > { %v1030_v5 = vpop.f32.mrf.mxu1  ;;  %v1201_v10 = vsel %vm269_vm0, %v1197_v6, %v1200_v62  ;;  %v1460_v29 = vrot.slane %v3428_v25, 4 }
 0x26d   : > { %v1601_v36 = vld.sshfl [vmem:[#allocation1] sm:$0xff pattern:$0x75316420]  ;;  %v1209_v15 = vperm.slane %v1201_v10, %v3111_v16  ;;  %v1210_v30 = vrot.slane %v1205_v26, 4  ;;  %v1078_v38 = vrot.slane %v1030_v5, 4  ;;  %v1243_v62 = vsel %vm269_vm0, %v1242_v1, %v1036_v40 }
 0x26e   : > { %1606 = vst [vmem:[#allocation1] ss:$2 sm:$0xff] %v1405_v35  ;;  %1602 = vrot.lane.b32.xlu0 %v1601_v36, %s3010_s14  ;;  %v1461_v35 = vsel %vm269_vm0, 0.0, %v1460_v29  ;;  %v1247_v6 = vperm.slane %v1243_v62, %v3109_v11  ;;  %v1080_v10 = vrot.slane %v1036_v40, 4 }
 0x26f   : > { %v1212_v22 = vrot.slane %v1209_v15, 4  ;;  %v1211_v37 = vsel %vm269_vm0, 0.0, %v1210_v30 }
 0x270   : > { %v1249_v14 = vsel %vm269_vm0, %v1039_v57, %v1080_v10  ;;  %v1256_v15 = vrot.slane %v1247_v6, 4  ;;  %v1048_v57 = vpop.f32.mrf.mxu3 }
 0x271   : > { %v1213_v28 = vsel %vm269_vm0, 0.0, %v1212_v22  ;;  %v1464_v47 = vsel %vm269_vm0, %v1212_v22, %v1205_v26  ;;  %v1253_v20 = vperm.slane %v1249_v14, %v3109_v11 }
 0x272   : > { %v1469_v32 = vrot.slane %v1213_v28, 4  ;;  %v1468_v53 = vperm.slane %v1464_v47, %v3109_v11 }
 0x273   : > { %v1257_v22 = vsel %vm269_vm0, %v1253_v20, %v1256_v15 }
 0x274   : > { %v1033_v21 = vpop.f32.mrf.mxu1  ;;  %v1470_v39 = vsel %vm269_vm0, %v1469_v32, %v1211_v37  ;;  %v1265_v28 = vperm.slane %v1257_v22, %v3111_v16 }
 0x275   : > { %v1607_v49 = vld.sshfl [vmem:[#allocation1] sm:$0xff pattern:$0x75316420]  ;;  %v1214_v27 = vrot.slane %v1033_v21, 4  ;;  %v1221_v41 = vsel %vm269_vm0, %v1033_v21, %v1078_v38  ;;  %v1474_v44 = vperm.slane %v1470_v39, %v3109_v11  ;;  %v1042_v39 = vpop.f32.mrf.mxu2 }
 0x276   : > { %1612 = vst [vmem:[#allocation1] ss:$2 sm:$0xff] %v1409_v48  ;;  %1608 = vrot.lane.b32.xlu2 %v1607_v49, %s3015_s16  ;;  %v1225_v45 = vperm.slane %v1221_v41, %v3109_v11 }
 0x277   : > { %v1215_v31 = vsel %vm269_vm0, %v1214_v27, %v1030_v5  ;;  %v1475_v51 = vrot.slane %v1474_v44, 4  ;;  %v1254_v27 = vrot.slane %v1253_v20, 4 }
 0x278   : > { %v1219_v36 = vperm.slane %v1215_v31, %v3109_v11  ;;  %v1226_v52 = vrot.slane %v1225_v45, 4 }
 0x279   : > { %v1476_v56 = vsel %vm269_vm0, %v1475_v51, %v1468_v53  ;;  %v1255_v32 = vsel %vm269_vm0, %v1254_v27, %v1247_v6 }
 0x27a   : > { %v1228_v43 = vrot.slane %v1219_v36, 4  ;;  %v3454_v63 = vperm.slane %v1476_v56, %v3111_v16  ;;  %v1261_v38 = vperm.slane %v1255_v32, %v3111_v16 }
 0x27c   : > { %v1229_v48 = vsel %vm269_vm0, %v1225_v45, %v1228_v43  ;;  %v1487_v4 = vrot.slane %v3454_v63, 4  ;;  %v1266_v43 = vrot.slane %v1261_v38, 4  ;;  %v1271_v45 = vsel %vm269_vm0, %v1270_v42, %v1042_v39 }
 0x27d   : > { %v1613_v58 = vld.sshfl [vmem:[#allocation1] sm:$0xff pattern:$0x75316420]  ;;  %v1237_v54 = vperm.slane %v1229_v48, %v3111_v16  ;;  %v1275_v47 = vperm.slane %v1271_v45, %v3109_v11 }
 0x27e   : > { %1618 = vst [vmem:[#allocation1] ss:$2 sm:$0xff] %v1434_v61  ;;  %1614 = vrot.lane.b32.xlu1 %v1613_v58, %s3012_s8  ;;  %v1227_v58 = vsel %vm269_vm0, %v1226_v52, %v1219_v36  ;;  %v1463_v61 = vsel %vm269_vm0, 0.0, %v1462_v55  ;;  %v1267_v52 = vsel %vm269_vm0, 0.0, %v1266_v43 }
 0x27f   : > { %v1240_v59 = vrot.slane %v1237_v54, 4  ;;  %v1233_v2 = vperm.slane %v1227_v58, %v3111_v16  ;;  %v1284_v56 = vrot.slane %v1275_v47, 4 }
 0x281   : > { %v1241_v3 = vsel %vm269_vm0, 0.0, %v1240_v59  ;;  %v1238_v5 = vrot.slane %v1233_v2, 4 }
 0x282   : > { %v1496_v60 = vrot.slane %v1241_v3, 4 }
 0x283   : > { %v1239_v12 = vsel %vm269_vm0, 0.0, %v1238_v5 }
 0x284   : > { %v1497_v13 = vsel %vm269_vm0, %v1496_v60, %v1239_v12 }
 0x285   : > { %v1619_v8 = vld.sshfl [vmem:[#allocation1] sm:$0xff pattern:$0x75316420]  ;;  %v1501_v18 = vperm.slane %v1497_v13, %v3109_v11 }
 0x286   : > { %1624 = vst [vmem:[#allocation1] ss:$2 sm:$0xff] %v1432_v7  ;;  %1620 = vrot.lane.b32.xlu1 %v1619_v8, %s3010_s14  ;;  %v1477_v7 = vrot.slane %v1468_v53, 4  ;;  %v1488_v8 = vsel %vm269_vm0, 0.0, %v1487_v4 }
 0x287   : > { %v1502_v26 = vrot.slane %v1501_v18, 4 }
 0x288   : > { %v1478_v17 = vsel %vm269_vm0, %v1474_v44, %v1477_v7  ;;  %v1082_v44 = vrot.slane %v1042_v39, 4 }
 0x289   : > { %v1486_v21 = vperm.slane %v1478_v17, %v3111_v16 }
 0x28a   : > { %v1277_v53 = vsel %vm269_vm0, %v1045_v34, %v1082_v44 }
 0x28b   : > { %v1489_v30 = vrot.slane %v1486_v21, 4  ;;  %v1281_v55 = vperm.slane %v1277_v53, %v3109_v11 }
 0x28d   : > { %v1625_v24 = vld.sshfl [vmem:[#allocation1] sm:$0xff pattern:$0x75316420]  ;;  %v1282_v1 = vrot.slane %v1281_v55, 4 }
 0x28e   : > { %1630 = vst [vmem:[#allocation1] ss:$2 sm:$0xff] %v1436_v23  ;;  %1626 = vrot.lane.b32.xlu0 %v1625_v24, %s3015_s16  ;;  %v1491_v23 = vsel %vm269_vm0, %v1240_v59, %v1233_v2  ;;  %v1285_v2 = vsel %vm269_vm0, %v1281_v55, %v1284_v56 }
 0x28f   : > { %v1495_v29 = vperm.slane %v1491_v23, %v3109_v11  ;;  %v1293_v5 = vperm.slane %v1285_v2, %v3111_v16  ;;  %v1283_v60 = vsel %vm269_vm0, %v1282_v1, %v1275_v47 }
 0x291   : > { %v1503_v31 = vsel %vm269_vm0, %v1502_v26, %v1495_v29  ;;  %v1504_v48 = vrot.slane %v1495_v29, 4  ;;  %v1296_v10 = vrot.slane %v1293_v5, 4  ;;  %v1084_v29 = vrot.slane %v1048_v57, 4 }
 0x292   : > { %v3480_v36 = vperm.slane %v1503_v31, %v3111_v16 }
 0x293   : > { %v1505_v58 = vsel %vm269_vm0, %v1501_v18, %v1504_v48  ;;  %v1297_v18 = vsel %vm269_vm0, 0.0, %v1296_v10 }
 0x294   : > { %v1514_v40 = vrot.slane %v3480_v36, 4  ;;  %v1550_v22 = vrot.slane %v1297_v18, 4 }
 0x295   : > { %v1631_v33 = vld.sshfl [vmem:[#allocation1] sm:$0xff pattern:$0x75316420] }
 0x296   : > { %1636 = vst [vmem:[#allocation1] ss:$2 sm:$0xff] %v1461_v35  ;;  %1632 = vrot.lane.b32.xlu2 %v1631_v33, %s3012_s8  ;;  %v1268_v33 = vrot.slane %v1265_v28, 4  ;;  %v1490_v35 = vsel %vm269_vm0, 0.0, %v1489_v30 }
 0x298   : > { %v1269_v41 = vsel %vm269_vm0, 0.0, %v1268_v33 }
 0x29d   : > { %v1637_v49 = vld.sshfl [vmem:[#allocation1] sm:$0xff pattern:$0x75316420] }
 0x29e   : > { %1638 = vrot.lane.b32.xlu0 %v1637_v49, %s3010_s14  ;;  %1642 = vst [vmem:[#allocation1] ss:$2 sm:$0xff] %v1459_v46  ;;  %v1523_v46 = vrot.slane %v1269_v41, 4  ;;  %v1515_v49 = vsel %vm269_vm0, 0.0, %v1514_v40 }
 0x2a0   : > { %v1524_v54 = vsel %vm269_vm0, %v1523_v46, %v1267_v52 }
 0x2a1   : > { %v1528_v59 = vperm.slane %v1524_v54, %v3109_v11 }
 0x2a3   : > { %v1529_v4 = vrot.slane %v1528_v59, 4 }
 0x2a5   : > { %v1643_v0 = vld.sshfl [vmem:[#allocation1] sm:$0xff pattern:$0x75316420] }
 0x2a6   : > { %1644 = vrot.lane.b32.xlu2 %v1643_v0, %s3015_s16  ;;  %1648 = vst [vmem:[#allocation1] ss:$2 sm:$0xff] %v1463_v61  ;;  %v1513_v61 = vperm.slane %v1505_v58, %v3111_v16  ;;  %v1518_v0 = vsel %vm269_vm0, %v1268_v33, %v1261_v38 }
 0x2a7   : > { %v1522_v62 = vperm.slane %v1518_v0, %v3109_v11 }
 0x2a8   : > { %v1516_v6 = vrot.slane %v1513_v61, 4 }
 0x2a9   : > { %v1530_v7 = vsel %vm269_vm0, %v1529_v4, %v1522_v62 }
 0x2aa   : > { %v3506_v12 = vperm.slane %v1530_v7, %v3111_v16  ;;  %v1517_v13 = vsel %vm269_vm0, 0.0, %v1516_v6 }
 0x2ac   : > { %v1541_v20 = vrot.slane %v3506_v12, 4 }
 0x2ad   : > { %v1649_v9 = vld.sshfl [vmem:[#allocation1] sm:$0xff pattern:$0x75316420] }
 0x2ae   : > { %1650 = vrot.lane.b32.xlu1 %v1649_v9, %s3012_s8  ;;  %1654 = vst [vmem:[#allocation1] ss:$2 sm:$0xff] %v1488_v8  ;;  %v1051_v8 = vpop.f32.mrf.mxu3  ;;  %v1289_v9 = vperm.slane %v1283_v60, %v3111_v16  ;;  %v1542_v26 = vsel %vm269_vm0, 0.0, %v1541_v20 }
 0x2af   : > { %v1298_v15 = vrot.slane %v1051_v8, 4  ;;  %v1305_v31 = vsel %vm269_vm0, %v1051_v8, %v1084_v29 }
 0x2b0   : > { %v1294_v17 = vrot.slane %v1289_v9, 4  ;;  %v1545_v38 = vsel %vm269_vm0, %v1296_v10, %v1289_v9 }
 0x2b1   : > { %v1549_v43 = vperm.slane %v1545_v38, %v3109_v11 }
 0x2b2   : > { %v1295_v23 = vsel %vm269_vm0, 0.0, %v1294_v17 }
 0x2b3   : > { %v1551_v30 = vsel %vm269_vm0, %v1550_v22, %v1295_v23  ;;  %v1558_v2 = vrot.slane %v1549_v43, 4 }
 0x2b4   : > { %v1555_v34 = vperm.slane %v1551_v30, %v3109_v11 }
 0x2b5   : > { %v1655_v24 = vld.sshfl [vmem:[#allocation1] sm:$0xff pattern:$0x75316420] }
 0x2b6   : > { %1656 = vrot.lane.b32.xlu1 %v1655_v24, %s3010_s14  ;;  %1660 = vst [vmem:[#allocation1] ss:$2 sm:$0xff] %v1486_v21  ;;  %v1299_v21 = vsel %vm269_vm0, %v1298_v15, %v1048_v57  ;;  %v1531_v24 = vrot.slane %v1522_v62, 4  ;;  %v1556_v42 = vrot.slane %v1555_v34, 4  ;;  %v1559_v60 = vsel %vm269_vm0, %v1555_v34, %v1558_v2 }
 0x2b7   : > { %v1303_v27 = vperm.slane %v1299_v21, %v3109_v11  ;;  %v1567_v7 = vperm.slane %v1559_v60, %v3111_v16 }
 0x2b8   : > { %v1532_v32 = vsel %vm269_vm0, %v1528_v59, %v1531_v24  ;;  %v1557_v46 = vsel %vm269_vm0, %v1556_v42, %v1549_v43  ;;  %v3016_v24 = vmov 0  }
 0x2b9   : > { %v1312_v33 = vrot.slane %v1303_v27, 4  ;;  %v3532_v52 = vperm.slane %v1557_v46, %v3111_v16  ;;  %v1570_v18 = vrot.slane %v1567_v7, 4  ;;  %2916 = vset.pattern.permute.xlu1 %v3016_v24  ;;  %2915 = vset.pattern.permute.xlu0 %v3016_v24 }
 0x2ba   : > { %2917 = vset.pattern.permute.xlu2 %v3016_v24 }
 0x2bd   : > { %v1661_v37 = vld.sshfl [vmem:[#allocation1] sm:$0xff pattern:$0x75316420] }
 0x2be   : > { %1662 = vrot.lane.b32.xlu0 %v1661_v37, %s3015_s16  ;;  %1666 = vst [vmem:[#allocation1] ss:$2 sm:$0xff] %v1490_v35  ;;  %v1309_v35 = vperm.slane %v1305_v31, %v3109_v11  ;;  %v1540_v37 = vperm.slane %v1532_v32, %v3111_v16 }
 0x2c0   : > { %v1313_v39 = vsel %vm269_vm0, %v1309_v35, %v1312_v33  ;;  %v1310_v40 = vrot.slane %v1309_v35, 4  ;;  %v1543_v45 = vrot.slane %v1540_v37, 4 }
 0x2c1   : > { %v1321_v44 = vperm.slane %v1313_v39, %v3111_v16 }
 0x2c2   : > { %v1311_v48 = vsel %vm269_vm0, %v1310_v40, %v1303_v27 }
 0x2c3   : > { %v1317_v55 = vperm.slane %v1311_v48, %v3111_v16  ;;  %v2921_v48 = vld [vmem:[%s4053_s2 + $0x2] ss:$0 sm:$0xff] }
 0x2c5   : > { %v1667_v51 = vld.sshfl [vmem:[#allocation1] sm:$0xff pattern:$0x75316420] }
 0x2c6   : > { %1668 = vrot.lane.b32.xlu2 %v1667_v51, %s3012_s8  ;;  %1672 = vst [vmem:[#allocation1] ss:$2 sm:$0xff] %v1515_v49  ;;  %v1324_v49 = vrot.slane %v1321_v44, 4  ;;  %v1544_v51 = vsel %vm269_vm0, 0.0, %v1543_v45  ;;  %v2918_v45 = vld [vmem:[%s4053_s2 + $0x3] ss:$0 sm:$0xff] }
 0x2c8   : > { %v1325_v57 = vsel %vm269_vm0, 0.0, %v1324_v49  ;;  %v1572_v8 = vsel %vm269_vm0, %v1324_v49, %v1317_v55  ;;  %v2922_v49 = vld [vmem:[%s4053_s2 + $0x4] ss:$0 sm:$0xff] }
 0x2c9   : > { %v1577_v1 = vrot.slane %v1325_v57, 4  ;;  %v1326_v57 = vld [vmem:[%s4052_s1] sm:$0xff] }
 0x2cd   : > { %v1673_v3 = vld.sshfl [vmem:[#allocation1] sm:$0xff pattern:$0x75316420] }
 0x2ce   : > { %1674 = vrot.lane.b32.xlu0 %v1673_v3, %s3010_s14  ;;  %1678 = vst [vmem:[#allocation1] ss:$2 sm:$0xff] %v1513_v61  ;;  %v1568_v61 = vrot.slane %v3532_v52, 4 }
 0x2d0   : > { %v1609_v56 = vpop.permute.xlu2 %1608  ;;  %v1569_v3 = vsel %vm269_vm0, 0.0, %v1568_v61  ;;  %v2925_v61 = vld [vmem:[%s4053_s2 + $0x7] ss:$0 sm:$0xff] }
 0x2d5   : > { %v1679_v14 = vld.sshfl [vmem:[#allocation1] sm:$0xff pattern:$0x75316420] }
 0x2d6   : > { %1680 = vrot.lane.b32.xlu2 %v1679_v14, %s3015_s16  ;;  %1684 = vst [vmem:[#allocation1] ss:$2 sm:$0xff] %v1517_v13  ;;  %v1576_v14 = vperm.slane %v1572_v8, %v3109_v11 }
 0x2d8   : > { %v1585_v29 = vrot.slane %v1576_v14, 4 }
 0x2dd   : > { %v1685_v28 = vld.sshfl [vmem:[#allocation1] sm:$0xff pattern:$0x75316420] }
 0x2de   : > { %1686 = vrot.lane.b32.xlu1 %v1685_v28, %s3012_s8  ;;  %1690 = vst [vmem:[#allocation1] ss:$2 sm:$0xff] %v1542_v26  ;;  %v1571_v26 = vsel %vm269_vm0, 0.0, %v1570_v18 }
 0x2e0   : > { %v1603_v47 = vpop.permute.xlu0 %1602 }
 0x2e1   : > { %v1743_v53 = vsel %vm520_vm2, %v3380_v19, %v1603_v47  ;;  %v1322_v19 = vrot.slane %v1317_v55, 4  ;;  %v2920_v47 = vld [vmem:[%s4053_s2 + $0x6] ss:$0 sm:$0xff] }
 0x2e2   : > { %v1745_v59 = vsel %vm1744_vm4, %v1743_v53, %v1609_v56 }
 0x2e3   : > { %v1323_v62 = vsel %vm269_vm0, 0.0, %v1322_v19 }
 0x2e4   : > { %v1578_v5 = vsel %vm269_vm0, %v1577_v1, %v1323_v62 }
 0x2e5   : > { %v1691_v41 = vld.sshfl [vmem:[#allocation1] sm:$0xff pattern:$0x75316420]  ;;  %v1582_v6 = vperm.slane %v1578_v5, %v3109_v11 }
 0x2e6   : > { %1692 = vrot.lane.b32.xlu1 %v1691_v41, %s3010_s14  ;;  %1696 = vst [vmem:[#allocation1] ss:$2 sm:$0xff] %v1540_v37 }
 0x2e7   : > { %v1583_v13 = vrot.slane %v1582_v6, 4  ;;  %v1586_v32 = vsel %vm269_vm0, %v1582_v6, %v1585_v29 }
 0x2e8   : > { %v1594_v33 = vperm.slane %v1586_v32, %v3111_v16 }
 0x2e9   : > { %v1584_v22 = vsel %vm269_vm0, %v1583_v13, %v1576_v14 }
 0x2ea   : > { %v3561_v27 = vperm.slane %v1584_v22, %v3111_v16  ;;  %v1597_v35 = vrot.slane %v1594_v33, 4 }
 0x2ec   : > { %v1595_v28 = vrot.slane %v3561_v27, 4  ;;  %v1598_v38 = vsel %vm269_vm0, 0.0, %v1597_v35 }
 0x2ed   : > { %v1697_v54 = vld.sshfl [vmem:[#allocation1] sm:$0xff pattern:$0x75316420] }
 0x2ee   : > { %1698 = vrot.lane.b32.xlu0 %v1697_v54, %s3015_s16  ;;  %1702 = vst [vmem:[#allocation1] ss:$2 sm:$0xff] %v1544_v51  ;;  %v1596_v30 = vsel %vm269_vm0, 0.0, %v1595_v28 }
 0x2f0   : > { %v1615_v58 = vpop.permute.xlu1 %1614  ;;  %v1633_v20 = vpop.permute.xlu2 %1632 }
 0x2f1   : > { %v1747_v0 = vsel %vm1746_vm5, %v1745_v59, %v1615_v58  ;;  %v2923_v59 = vld [vmem:[%s4053_s2 + $0x5] ss:$0 sm:$0xff] }
 0x2f2   : > { %2803 = vmatpush.msk.msrb.mxu2 %vm1915_vm6, %v1747_v0 }
 0x2f3   : > { %2804 = vmatmul.msk.f32.vlgmr.msrb.gmra.mxu2 %vm1911_vm7, %v1326_v57 }
 0x2f5   : > { %v1703_v4 = vld.sshfl [vmem:[#allocation1] sm:$0xff pattern:$0x75316420] }
 0x2f6   : > { %1704 = vrot.lane.b32.xlu2 %v1703_v4, %s3012_s8  ;;  %1708 = vst [vmem:[#allocation1] ss:$2 sm:$0xff] %v1569_v3 }
 0x2f8   : > { %v1621_v9 = vpop.permute.xlu1 %1620 }
 0x2f9   : > { %v1748_v15 = vsel %vm520_vm2, %v3402_v50, %v1621_v9 }
 0x2fd   : > { %v1709_v10 = vld.sshfl [vmem:[#allocation1] sm:$0xff pattern:$0x75316420] }
 0x2fe   : > { %1710 = vrot.lane.b32.xlu0 %v1709_v10, %s3010_s14  ;;  %1714 = vst [vmem:[#allocation1] ss:$2 sm:$0xff] %v1567_v7 }
 0x300   : > { %v1627_v17 = vpop.permute.xlu0 %1626  ;;  %v1645_v42 = vpop.permute.xlu2 %1644 }
 0x301   : > { %v1749_v21 = vsel %vm1744_vm4, %v1748_v15, %v1627_v17 }
 0x302   : > { %v1750_v23 = vsel %vm1746_vm5, %v1749_v21, %v1633_v20 }
 0x303   : > { %2805 = vmatpush.msk.msrb.mxu3 %vm1915_vm6, %v1750_v23 }
 0x304   : > { %2806 = vmatmul.msk.f32.vlgmr.msrb.gmra.mxu3 %vm1911_vm7, %v1326_v57 }
 0x305   : > { %v1715_v50 = vld.sshfl [vmem:[#allocation1] sm:$0xff pattern:$0x75316420] }
 0x306   : > { %1716 = vrot.lane.b32.xlu2 %v1715_v50, %s3015_s16  ;;  %1720 = vst [vmem:[#allocation1] ss:$2 sm:$0xff] %v1571_v26 }
 0x30d   : > { %v1721_v31 = vld.sshfl [vmem:[#allocation1] sm:$0xff pattern:$0x75316420] }
 0x30e   : > { %1726 = vst [vmem:[#allocation1] ss:$2 sm:$0xff] %v1596_v30 }
 0x310   : > { %v1639_v37 = vpop.permute.xlu0 %1638 }
 0x311   : > { %v1751_v39 = vsel %vm520_vm2, %v3428_v25, %v1639_v37  ;;  %v2919_v25 = vld [vmem:[%s4053_s2 + $0x1] ss:$0 sm:$0xff] }
 0x312   : > { %v1752_v40 = vsel %vm1744_vm4, %v1751_v39, %v1645_v42 }
 0x315   : > { %v1727_v34 = vld.sshfl [vmem:[#allocation1] sm:$0xff pattern:$0x75316420] }
 0x316   : > { %1728 = vrot.lane.b32.xlu1 %v1727_v34, %s3010_s14  ;;  %1732 = vst [vmem:[#allocation1] ss:$2 sm:$0xff] %v1594_v33 }
 0x31d   : > { %v1733_v41 = vld.sshfl [vmem:[#allocation1] sm:$0xff pattern:$0x75316420] }
 0x31e   : > { %1722 = vrot.lane.b32.xlu1 %v1721_v31, %s3012_s8  ;;  %1734 = vrot.lane.b32.xlu0 %v1733_v41, %s3015_s16  ;;  %1738 = vst [vmem:[#allocation1] ss:$2 sm:$0xff] %v1598_v38 }
 0x320   : > { %v1651_v43 = vpop.permute.xlu1 %1650  ;;  %v1669_v55 = vpop.permute.xlu2 %1668 }
 0x321   : > { %v1753_v44 = vsel %vm1746_vm5, %v1752_v40, %v1651_v43 }
 0x322   : > { %2807 = vmatpush.msk.msra.mxu2 %vm1915_vm6, %v1753_v44 }
 0x323   : > { %2808 = vmatmul.msk.f32.vlgmr.msra.gmra.mxu2 %vm1911_vm7, %v1326_v57 }
 0x325   : > { %v1739_v46 = vld.sshfl [vmem:[#allocation1] sm:$0xff pattern:$0x75316420] }
 0x326   : > { %1364 = vperm.xlu1 %2916, %v2918_v45   ;;  %1356 = vperm.xlu0 %2915, %v2919_v25  }
 0x327   : > { %1740 = vrot.lane.b32.xlu2 %v1739_v46, %s3012_s8 }
 0x328   : > { %v1657_v51 = vpop.permute.xlu1 %1656 }
 0x329   : > { %v1754_v53 = vsel %vm520_vm2, %v3454_v63, %v1657_v51  ;;  %v2924_v63 = vld [vmem:[%s4053_s2] ss:$0 sm:$0xff] }
 0x32e   : > { %1376 = vperm.xlu1 %2916, %v2920_v47   ;;  %1360 = vperm.xlu0 %2915, %v2921_v48  }
 0x32f   : > { %1368 = vperm.xlu2 %2917, %v2922_v49  }
 0x330   : > { %v1663_v54 = vpop.permute.xlu0 %1662  ;;  %v1681_v1 = vpop.permute.xlu2 %1680 }
 0x331   : > { %v1755_v56 = vsel %vm1744_vm4, %v1754_v53, %v1663_v54 }
 0x332   : > { %v1756_v58 = vsel %vm1746_vm5, %v1755_v56, %v1669_v55 }
 0x333   : > { %2809 = vmatpush.msk.msra.mxu3 %vm1915_vm6, %v1756_v58 }
 0x334   : > { %2810 = vmatmul.msk.f32.vlgmr.msra.gmra.mxu3 %vm1911_vm7, %v1326_v57 }
 0x336   : > { %1372 = vperm.xlu1 %2916, %v2923_v59  }
 0x337   : > { %1352 = vperm.xlu2 %2917, %v2924_v63  }
 0x33f   : > { %1380 = vperm.xlu2 %2917, %v2925_v61  }
 0x340   : > { %v1675_v0 = vpop.permute.xlu0 %1674 }
 0x341   : > { %v1757_v19 = vsel %vm520_vm2, %v3480_v36, %v1675_v0 }
 0x342   : > { %v1758_v2 = vsel %vm1744_vm4, %v1757_v19, %v1681_v1 }
 0x350   : > { %v1687_v3 = vpop.permute.xlu1 %1686  ;;  %v1705_v6 = vpop.permute.xlu2 %1704 }
 0x351   : > { %v1759_v4 = vsel %vm1746_vm5, %v1758_v2, %v1687_v3 }
 0x352   : > { %2811 = vmatpush.msk.msrb.mxu2 %vm1915_vm6, %v1759_v4 }
 0x353   : > { %2812 = vmatmul.msk.f32.vlgmr.msrb.gmra.mxu2 %vm1911_vm7, %v1326_v57 }
 0x358   : > { %v1693_v62 = vpop.permute.xlu1 %1692 }
 0x359   : > { %v1760_v5 = vsel %vm520_vm2, %v3506_v12, %v1693_v62 }
 0x360   : > { %v1699_v60 = vpop.permute.xlu0 %1698  ;;  %v1717_v8 = vpop.permute.xlu2 %1716 }
 0x361   : > { %v1761_v7 = vsel %vm1744_vm4, %v1760_v5, %v1699_v60 }
 0x362   : > { %v1762_v36 = vsel %vm1746_vm5, %v1761_v7, %v1705_v6 }
 0x363   : > { %2813 = vmatpush.msk.msrb.mxu3 %vm1915_vm6, %v1762_v36 }
 0x364   : > { %2814 = vmatmul.msk.f32.vlgmr.msrb.gmra.mxu3 %vm1911_vm7, %v1326_v57 }
 0x370   : > { %v1711_v10 = vpop.permute.xlu0 %1710 }
 0x371   : > { %v1763_v14 = vsel %vm520_vm2, %v3532_v52, %v1711_v10 }
 0x372   : > { %v1764_v17 = vsel %vm1744_vm4, %v1763_v14, %v1717_v8 }
 0x381   : > { %v1741_v9 = vpop.permute.xlu2 %1740 }
 0x388   : > { %v1729_v13 = vpop.permute.xlu1 %1728 }
 0x389   : > { %v1369_v15 = vpop.permute.xlu2 %1368  ;;  %v1766_v12 = vsel %vm520_vm2, %v3561_v27, %v1729_v13 }
 0x38a   : > { %v1795_v33 = vrot.slane %v1369_v15, 4 }
 0x390   : > { %v1723_v18 = vpop.permute.xlu1 %1722  ;;  %v1735_v20 = vpop.permute.xlu0 %1734 }
 0x391   : > { %v1765_v21 = vsel %vm1746_vm5, %v1764_v17, %v1723_v18  ;;  %v1767_v22 = vsel %vm1744_vm4, %v1766_v12, %v1735_v20  ;;  %v1353_v26 = vpop.permute.xlu2 %1352 }
 0x392   : > { %v1768_v23 = vsel %vm1746_vm5, %v1767_v22, %v1741_v9  ;;  %2815 = vmatpush.msk.msra.mxu2 %vm1915_vm6, %v1765_v21  ;;  %v1771_v28 = vrot.slane %v1353_v26, 4 }
 0x393   : > { %2817 = vmatpush.msk.msra.mxu3 %vm1915_vm6, %v1768_v23  ;;  %2816 = vmatmul.msk.f32.vlgmr.msra.gmra.mxu2 %vm1911_vm7, %v1326_v57 }
 0x394   : > { %2818 = vmatmul.msk.f32.vlgmr.msra.gmra.mxu3 %vm1911_vm7, %v1326_v57 }
 0x398   : > { %v1365_v52 = vpop.permute.xlu1 %1364  ;;  %v1357_v24 = vpop.permute.xlu0 %1356 }
 0x399   : > { %v1781_v27 = vrot.slane %v1365_v52, 4  ;;  %v1783_v50 = vrot.slane %v1357_v24, 4  ;;  %v1381_v43 = vpop.permute.xlu2 %1380 }
 0x39a   : > { %v1805_v49 = vrot.slane %v1381_v43, 4 }
 0x39b   : > { %v1782_v29 = vsel %vm269_vm0, %v1781_v27, %v1357_v24  ;;  %v1784_v30 = vsel %vm269_vm0, %v1365_v52, %v1783_v50 }
 0x39c   : > { %v1788_v38 = vperm.slane %v1782_v29, %v3109_v11  ;;  %v1792_v39 = vperm.slane %v1784_v30, %v3109_v11 }
 0x39e   : > { %v1817_v25 = vrot.slane %v1788_v38, 4  ;;  %v1829_v46 = vrot.slane %v1792_v39, 4 }
 0x3a0   : > { %v1377_v31 = vpop.permute.xlu1 %1376  ;;  %v1361_v32 = vpop.permute.xlu0 %1360 }
 0x3a1   : > { %v1793_v34 = vrot.slane %v1377_v31, 4  ;;  %v1769_v35 = vrot.slane %v1361_v32, 4  ;;  %v1772_v37 = vsel %vm269_vm0, %v1361_v32, %v1771_v28  ;;  %v1796_v42 = vsel %vm269_vm0, %v1377_v31, %v1795_v33 }
 0x3a2   : > { %v1780_v45 = vperm.slane %v1772_v37, %v3109_v11  ;;  %v1804_v48 = vperm.slane %v1796_v42, %v3109_v11 }
 0x3a3   : > { %v1794_v41 = vsel %vm269_vm0, %v1793_v34, %v1369_v15  ;;  %v1770_v40 = vsel %vm269_vm0, %v1769_v35, %v1353_v26 }
 0x3a4   : > { %v1776_v44 = vperm.slane %v1770_v40, %v3109_v11  ;;  %v1800_v47 = vperm.slane %v1794_v41, %v3109_v11  ;;  %v1830_v53 = vsel %vm269_vm0, %v1829_v46, %v1780_v45  ;;  %v1855_v59 = vrot.slane %v1804_v48, 4  ;;  %v1977_v46 = vpop.f32.mrf.mxu3 }
 0x3a5   : > { %v1831_v61 = vrot.slane %v1780_v45, 4  ;;  %v1836_v1 = vperm.slane %v1830_v53, %v3111_v16 }
 0x3a6   : > { %v1819_v51 = vrot.slane %v1776_v44, 4  ;;  %v1818_v55 = vsel %vm269_vm0, %v1817_v25, %v1776_v44  ;;  %v1843_v58 = vrot.slane %v1800_v47, 4 }
 0x3a7   : > { %v1824_v19 = vperm.slane %v1818_v55, %v3111_v16  ;;  %v1875_v14 = vrot.slane %v1836_v1, 4  ;;  %v1832_v15 = vsel %vm269_vm0, %v1792_v39, %v1831_v61  ;;  %v1957_v39 = vpop.f32.mrf.mxu2 }
 0x3a8   : > { %v1373_v54 = vpop.permute.xlu1 %1372  ;;  %v1820_v62 = vsel %vm269_vm0, %v1788_v38, %v1819_v51  ;;  %v1840_v52 = vperm.slane %v1832_v15, %v3111_v16 }
 0x3a9   : > { %v1806_v56 = vsel %vm269_vm0, %v1805_v49, %v1373_v54  ;;  %v1807_v57 = vrot.slane %v1373_v54, 4  ;;  %v1828_v36 = vperm.slane %v1820_v62, %v3111_v16  ;;  %v1867_v10 = vrot.slane %v1824_v19, 4 }
 0x3aa   : > { %v1812_v63 = vperm.slane %v1806_v56, %v3109_v11  ;;  %v1879_v50 = vrot.slane %v1840_v52, 4 }
 0x3ab   : > { %v1808_v0 = vsel %vm269_vm0, %v1381_v43, %v1807_v57  ;;  %v1871_v30 = vrot.slane %v1828_v36, 4 }
 0x3ac   : > { %v1816_v2 = vperm.slane %v1808_v0, %v3109_v11  ;;  %v1841_v3 = vrot.slane %v1812_v63, 4  ;;  %v1844_v4 = vsel %vm269_vm0, %v1812_v63, %v1843_v58 }
 0x3ad   : > { %v1852_v5 = vperm.slane %v1844_v4, %v3111_v16 }
 0x3ae   : > { %v1853_v60 = vrot.slane %v1816_v2, 4  ;;  %v1842_v6 = vsel %vm269_vm0, %v1841_v3, %v1800_v47  ;;  %v1856_v7 = vsel %vm269_vm0, %v1816_v2, %v1855_v59 }
 0x3af   : > { %v1869_v8 = vrot.slane %v1852_v5, 4  ;;  %v1848_v9 = vperm.slane %v1842_v6, %v3111_v16  ;;  %v1864_v12 = vperm.slane %v1856_v7, %v3111_v16  ;;  %v1872_v31 = vsel %vm269_vm0, %v1852_v5, %v1871_v30 }
 0x3b0   : > { %v1854_v13 = vsel %vm269_vm0, %v1853_v60, %v1804_v48  ;;  %v1997_v48 = vpop.f32.mrf.mxu2 }
 0x3b1   : > { %v1870_v17 = vsel %vm269_vm0, %v1869_v8, %v1828_v36  ;;  %v1868_v18 = vsel %vm269_vm0, %v1848_v9, %v1867_v10  ;;  %v1865_v20 = vrot.slane %v1848_v9, 4  ;;  %v1860_v21 = vperm.slane %v1854_v13, %v3111_v16 }
 0x3b2   : > { %1886 = vrot.lane.b32.xlu2 %v1870_v17, %s3015_s16  ;;  %1882 = vrot.lane.b32.xlu0 %v1868_v18, %s3010_s14  ;;  %v1877_v26 = vrot.slane %v1864_v12, 4  ;;  %v1880_v28 = vsel %vm269_vm0, %v1864_v12, %v1879_v50 }
 0x3b3   : > { %v1876_v22 = vsel %vm269_vm0, %v1860_v21, %v1875_v14  ;;  %v1873_v23 = vrot.slane %v1860_v21, 4  ;;  %v1866_v24 = vsel %vm269_vm0, %v1865_v20, %v1824_v19 }
 0x3b4   : > { %1894 = vrot.lane.b32.xlu1 %v1876_v22, %s3010_s14  ;;  %v1878_v29 = vsel %vm269_vm0, %v1877_v26, %v1840_v52 }
 0x3b5   : > { %v1874_v27 = vsel %vm269_vm0, %v1873_v23, %v1836_v1 }
 0x3b7   : > { %v2017_v51 = vpop.f32.mrf.mxu3 }
 0x3ba   : > { %1902 = vrot.lane.b32.xlu2 %v1880_v28, %s3012_s8  ;;  %1898 = vrot.lane.b32.xlu0 %v1878_v29, %s3015_s16 }
 0x3bc   : > { %1890 = vrot.lane.b32.xlu1 %v1872_v31, %s3012_s8 }
 0x3d6   : > { %v2037_v54 = vpop.f32.mrf.mxu2 }
 0x3e7   : > { %v2057_v56 = vpop.f32.mrf.mxu3 }
 0x40c   : > { %v1887_v34 = vpop.permute.xlu2 %1886 }
 0x414   : > { %v1903_v45 = vpop.permute.xlu2 %1902 }
 0x416   : > { %v2077_v58 = vpop.f32.mrf.mxu2 }
 0x417   : > { %v2097_v63 = vpop.f32.mrf.mxu3 }
 0x424   : > { %v1883_v32 = vpop.permute.xlu0 %1882 }
 0x425   : > { %v1905_v35 = vsel %vm520_vm2, %v1866_v24, %v1883_v32 }
 0x426   : > { %v1895_v33 = vpop.permute.xlu1 %1894  ;;  %v1906_v38 = vsel %vm1744_vm4, %v1905_v35, %v1887_v34 }
 0x427   : > { %v1908_v43 = vsel %vm520_vm2, %v1874_v27, %v1895_v33 }
 0x42c   : > { %v1899_v41 = vpop.permute.xlu0 %1898 }
 0x42d   : > { %v1909_v44 = vsel %vm1744_vm4, %v1908_v43, %v1899_v41 }
 0x42e   : > { %v1891_v37 = vpop.permute.xlu1 %1890  ;;  %v1910_v25 = vsel %vm1746_vm5, %v1909_v44, %v1903_v45 }
 0x42f   : > { %v1907_v42 = vsel %vm1746_vm5, %v1906_v38, %v1891_v37  ;;  %v3693_v47 = vadd.f32 %v1977_v46, %v1910_v25  ;;  %v3709_v53 = vadd.f32 %v2017_v51, %v1910_v25  ;;  %v3725_v57 = vadd.f32 %v2057_v56, %v1910_v25 }
 0x430   : > { %v1958_v40 = vadd.f32 %v1957_v39, %v1907_v42  ;;  %v3701_v49 = vadd.f32 %v1997_v48, %v1907_v42  ;;  %v3717_v55 = vadd.f32 %v2037_v54, %v1907_v42  ;;  %v3733_v59 = vadd.f32 %v2077_v58, %v1907_v42 }
 0x431   : > { %v3741_v61 = vadd.f32 %v2097_v63, %v1910_v25  ;;  %v2206_v22 = vrot.slane %v3693_v47, 4 }
 0x432   : > { %2107 = vrot.lane.b32.xlu2 %v1958_v40, %s3010_s14  ;;  %2104 = vrot.lane.b32.xlu1 %v1958_v40, %s3015_s16  ;;  %v2182_v1 = vrot.slane %v1958_v40, 4  ;;  %v2294_v46 = vrot.slane %v3701_v49, 4 }
 0x433   : > { %2101 = vrot.lane.b32.xlu0 %v1958_v40, %s3012_s8 }
 0x43a   : > { %2117 = vrot.lane.b32.xlu2 %v3693_v47, %s3010_s14  ;;  %2114 = vrot.lane.b32.xlu1 %v3693_v47, %s3015_s16 }
 0x43b   : > { %2111 = vrot.lane.b32.xlu0 %v3693_v47, %s3012_s8 }
 0x442   : > { %2127 = vrot.lane.b32.xlu2 %v3701_v49, %s3010_s14  ;;  %2124 = vrot.lane.b32.xlu1 %v3701_v49, %s3015_s16 }
 0x443   : > { %2121 = vrot.lane.b32.xlu0 %v3701_v49, %s3012_s8 }
 0x44a   : > { %2137 = vrot.lane.b32.xlu2 %v3709_v53, %s3010_s14  ;;  %2134 = vrot.lane.b32.xlu1 %v3709_v53, %s3015_s16 }
 0x44b   : > { %2131 = vrot.lane.b32.xlu0 %v3709_v53, %s3012_s8 }
 0x452   : > { %2147 = vrot.lane.b32.xlu2 %v3717_v55, %s3010_s14  ;;  %2144 = vrot.lane.b32.xlu1 %v3717_v55, %s3015_s16 }
 0x453   : > { %2141 = vrot.lane.b32.xlu0 %v3717_v55, %s3012_s8 }
 0x45a   : > { %2157 = vrot.lane.b32.xlu2 %v3725_v57, %s3010_s14  ;;  %2154 = vrot.lane.b32.xlu1 %v3725_v57, %s3015_s16 }
 0x45b   : > { %2151 = vrot.lane.b32.xlu0 %v3725_v57, %s3012_s8 }
 0x462   : > { %2167 = vrot.lane.b32.xlu2 %v3733_v59, %s3010_s14  ;;  %2164 = vrot.lane.b32.xlu1 %v3733_v59, %s3015_s16 }
 0x463   : > { %2161 = vrot.lane.b32.xlu0 %v3733_v59, %s3012_s8 }
 0x46a   : > { %2177 = vrot.lane.b32.xlu2 %v3741_v61, %s3010_s14  ;;  %2174 = vrot.lane.b32.xlu1 %v3741_v61, %s3015_s16  ;;  %s245_s14 = sand.u32 1, %s2988_s19  }
 0x46b   : > { %2171 = vrot.lane.b32.xlu0 %v3741_v61, %s3012_s8  ;;  %s2772_s8 = sshll.u32 %s245_s14, 8  ;;  %s2661_s15 = scalar_lea.sflag [#allocation3], %s245_s14 }
 0x46c   : > { %s3795_s16 = scalar_lea.vmem [#allocation2], %s2772_s8 }
 0x46d   : > { %s2675_s12 = sshll.u32 %s3795_s16, 4  ;;  %s2676_s12 = int_to_ptr.vmem [resolvable:$true] %s2675_s12 }
 0x48c   : > { %v2108_v0 = vpop.permute.xlu2 %2107 }
 0x48d   : > { %v2192_v2 = vrot.slane %v2108_v0, 4 }
 0x494   : > { %v2118_v19 = vpop.permute.xlu2 %2117 }
 0x495   : > { %v2216_v52 = vrot.slane %v2118_v19, 4 }
 0x49c   : > { %v3754_v9 = vpop.permute.xlu2 %2127 }
 0x49d   : > { %v2304_v44 = vrot.slane %v3754_v9, 4 }
 0x4a4   : > { %v2105_v3 = vpop.permute.xlu1 %2104  ;;  %v3774_v39 = vpop.permute.xlu2 %2137 }
 0x4a5   : > { %v2180_v4 = vrot.slane %v2105_v3, 4  ;;  %v2183_v62 = vsel %vm269_vm0, %v2105_v3, %v2182_v1  ;;  %v2102_v5 = vpop.permute.xlu0 %2101 }
 0x4a6   : > { %v2191_v60 = vperm.slane %v2183_v62, %v3109_v11  ;;  %v2193_v6 = vsel %vm269_vm0, %v2192_v2, %v2102_v5  ;;  %v2194_v7 = vrot.slane %v2102_v5, 4 }
 0x4a7   : > { %v2181_v36 = vsel %vm269_vm0, %v2180_v4, %v1958_v40  ;;  %v2199_v8 = vperm.slane %v2193_v6, %v3109_v11 }
 0x4a8   : > { %v2187_v10 = vperm.slane %v2181_v36, %v3109_v11  ;;  %v2242_v13 = vrot.slane %v2191_v60, 4  ;;  %v2195_v14 = vsel %vm269_vm0, %v2108_v0, %v2194_v7 }
 0x4a9   : > { %v2203_v15 = vperm.slane %v2195_v14, %v3109_v11  ;;  %v2228_v12 = vrot.slane %v2199_v8, 4 }
 0x4aa   : > { %v2230_v17 = vrot.slane %v2187_v10, 4 }
 0x4ab   : > { %v2229_v18 = vsel %vm269_vm0, %v2228_v12, %v2187_v10  ;;  %v2240_v20 = vrot.slane %v2203_v15, 4  ;;  %v2243_v21 = vsel %vm269_vm0, %v2203_v15, %v2242_v13 }
 0x4ac   : > { %v2115_v23 = vpop.permute.xlu1 %2114  ;;  %v2231_v27 = vsel %vm269_vm0, %v2199_v8, %v2230_v17  ;;  %v2235_v50 = vperm.slane %v2229_v18, %v3111_v16  ;;  %v2251_v29 = vperm.slane %v2243_v21, %v3111_v16 }
 0x4ad   : > { %v2204_v24 = vrot.slane %v2115_v23, 4  ;;  %v2112_v26 = vpop.permute.xlu0 %2111  ;;  %v2207_v28 = vsel %vm269_vm0, %v2115_v23, %v2206_v22  ;;  %v2241_v33 = vsel %vm269_vm0, %v2240_v20, %v2191_v60  ;;  %v2239_v41 = vperm.slane %v2231_v27, %v3111_v16 }
 0x4ae   : > { %v2215_v31 = vperm.slane %v2207_v28, %v3109_v11  ;;  %v2217_v32 = vsel %vm269_vm0, %v2216_v52, %v2112_v26  ;;  %v2218_v35 = vrot.slane %v2112_v26, 4  ;;  %v2247_v45 = vperm.slane %v2241_v33, %v3111_v16  ;;  %v3816_v26 = vpop.permute.xlu2 %2147 }
 0x4af   : > { %v2205_v30 = vsel %vm269_vm0, %v2204_v24, %v3693_v47  ;;  %v2223_v37 = vperm.slane %v2217_v32, %v3109_v11  ;;  %v2278_v47 = vrot.slane %v2235_v50, 4  ;;  %v2290_v48 = vrot.slane %v2251_v29, 4 }
 0x4b0   : > { %v2211_v34 = vperm.slane %v2205_v30, %v3109_v11  ;;  %v2266_v38 = vrot.slane %v2215_v31, 4  ;;  %v2219_v40 = vsel %vm269_vm0, %v2118_v19, %v2218_v35  ;;  %v2282_v2 = vrot.slane %v2239_v41, 4 }
 0x4b1   : > { %v2252_v43 = vrot.slane %v2223_v37, 4  ;;  %v2227_v25 = vperm.slane %v2219_v40, %v3109_v11  ;;  %v2286_v36 = vrot.slane %v2247_v45, 4  ;;  %v2318_v22 = vrot.slane %v3709_v53, 4 }
 0x4b2   : > { %v2254_v42 = vrot.slane %v2211_v34, 4 }
 0x4b3   : > { %v2253_v51 = vsel %vm269_vm0, %v2252_v43, %v2211_v34  ;;  %v2264_v0 = vrot.slane %v2227_v25, 4  ;;  %v2267_v19 = vsel %vm269_vm0, %v2227_v25, %v2266_v38 }
 0x4b4   : > { %v2255_v54 = vsel %vm269_vm0, %v2223_v37, %v2254_v42  ;;  %v2125_v56 = vpop.permute.xlu1 %2124  ;;  %v2259_v58 = vperm.slane %v2253_v51, %v3111_v16  ;;  %v2275_v3 = vperm.slane %v2267_v19, %v3111_v16  ;;  %v2416_v19 = vrot.slane %v3816_v26, 4 }
 0x4b5   : > { %v2263_v63 = vperm.slane %v2255_v54, %v3111_v16  ;;  %v2122_v1 = vpop.permute.xlu0 %2121  ;;  %v2292_v4 = vrot.slane %v2125_v56, 4  ;;  %v2295_v62 = vsel %vm269_vm0, %v2125_v56, %v2294_v46  ;;  %v2265_v5 = vsel %vm269_vm0, %v2264_v0, %v2215_v31 }
 0x4b6   : > { %v2276_v60 = vrot.slane %v2259_v58, 4  ;;  %v2279_v6 = vsel %vm269_vm0, %v2259_v58, %v2278_v47  ;;  %v2271_v8 = vperm.slane %v2265_v5, %v3111_v16  ;;  %v2288_v13 = vrot.slane %v2275_v3, 4 }
 0x4b7   : > { %v2280_v7 = vrot.slane %v2263_v63, 4  ;;  %v2283_v10 = vsel %vm269_vm0, %v2263_v63, %v2282_v2  ;;  %2632 = vst.msk [vmem:[%s3795_s16 + $0x20] sm:$0xff] %vm520_vm2, %v2279_v6  ;;  %v2293_v12 = vsel %vm269_vm0, %v2292_v4, %v3701_v49  ;;  %v2303_v17 = vperm.slane %v2295_v62, %v3109_v11 }
 0x4b8   : > { %v2277_v14 = vsel %vm269_vm0, %v2276_v60, %v2235_v50  ;;  %2640 = vst.msk [vmem:[%s3795_s16 + $0x60] sm:$0xff] %vm520_vm2, %v2283_v10  ;;  %v2284_v18 = vrot.slane %v2271_v8, 4  ;;  %v2287_v20 = vsel %vm269_vm0, %v2271_v8, %v2286_v36  ;;  %v2299_v21 = vperm.slane %v2293_v12, %v3109_v11 }
 0x4b9   : > { %v2281_v15 = vsel %vm269_vm0, %v2280_v7, %v2239_v41  ;;  %2628 = vst.msk [vmem:[%s3795_s16] sm:$0xff] %vm520_vm2, %v2277_v14  ;;  %v2289_v23 = vsel %vm269_vm0, %v2288_v13, %v2251_v29  ;;  %v2291_v52 = vsel %vm269_vm0, %v2275_v3, %v2290_v48  ;;  %v2305_v49 = vsel %vm269_vm0, %v2304_v44, %v2122_v1  ;;  %v3856_v13 = vpop.permute.xlu2 %2157 }
 0x4ba   : > { %2636 = vst.msk [vmem:[%s3795_s16 + $0x40] sm:$0xff] %vm520_vm2, %v2281_v15  ;;  %v2306_v24 = vrot.slane %v2122_v1, 4  ;;  %v2285_v27 = vsel %vm269_vm0, %v2284_v18, %v2247_v45  ;;  %v2342_v50 = vrot.slane %v2299_v21, 4  ;;  %v2354_v28 = vrot.slane %v2303_v17, 4 }
 0x4bb   : > { %2648 = vst.msk [vmem:[%s3795_s16 + $0xa0] sm:$0xff] %vm520_vm2, %v2287_v20  ;;  %v2311_v30 = vperm.slane %v2305_v49, %v3109_v11  ;;  %v2328_v31 = vrot.slane %v3774_v39, 4  ;;  %v2430_v56 = vrot.slane %v3725_v57, 4  ;;  %v2406_v3 = vrot.slane %v3717_v55, 4 }
 0x4bc   : > { %v2135_v29 = vpop.permute.xlu1 %2134  ;;  %2644 = vst.msk [vmem:[%s3795_s16 + $0x80] sm:$0xff] %vm520_vm2, %v2285_v27  ;;  %v2307_v32 = vsel %vm269_vm0, %v3754_v9, %v2306_v24 }
 0x4bd   : > { %v2316_v33 = vrot.slane %v2135_v29, 4  ;;  %v2319_v34 = vsel %vm269_vm0, %v2135_v29, %v2318_v22  ;;  %v2132_v35 = vpop.permute.xlu0 %2131  ;;  %2652 = vst.msk [vmem:[%s3795_s16 + $0xc0] sm:$0xff] %vm520_vm2, %v2289_v23  ;;  %v2315_v37 = vperm.slane %v2307_v32, %v3109_v11  ;;  %v2340_v38 = vrot.slane %v2311_v30, 4 }
 0x4be   : > { %v2343_v41 = vsel %vm269_vm0, %v2311_v30, %v2342_v50  ;;  %v2327_v42 = vperm.slane %v2319_v34, %v3109_v11  ;;  %2656 = vst.msk [vmem:[%s3795_s16 + $0xe0] sm:$0xff] %vm520_vm2, %v2291_v52  ;;  %v2329_v43 = vsel %vm269_vm0, %v2328_v31, %v2132_v35  ;;  %v2330_v44 = vrot.slane %v2132_v35, 4 }
 0x4bf   : > { %v2351_v40 = vperm.slane %v2343_v41, %v3111_v16  ;;  %v2317_v9 = vsel %vm269_vm0, %v2316_v33, %v3709_v53  ;;  %v2341_v45 = vsel %vm269_vm0, %v2340_v38, %v2299_v21  ;;  %v2352_v25 = vrot.slane %v2315_v37, 4 }
 0x4c0   : > { %v2355_v46 = vsel %vm269_vm0, %v2315_v37, %v2354_v28  ;;  %v2323_v47 = vperm.slane %v2317_v9, %v3109_v11  ;;  %v2347_v48 = vperm.slane %v2341_v45, %v3111_v16  ;;  %v2378_v54 = vrot.slane %v2327_v42, 4 }
 0x4c1   : > { %v2363_v51 = vperm.slane %v2355_v46, %v3111_v16  ;;  %v2353_v58 = vsel %vm269_vm0, %v2352_v25, %v2303_v17  ;;  %v2331_v63 = vsel %vm269_vm0, %v3774_v39, %v2330_v44  ;;  %v2335_v0 = vperm.slane %v2329_v43, %v3109_v11 }
 0x4c2   : > { %v2366_v53 = vrot.slane %v2323_v47, 4  ;;  %v2359_v1 = vperm.slane %v2353_v58, %v3111_v16  ;;  %v2339_v2 = vperm.slane %v2331_v63, %v3109_v11  ;;  %v2390_v4 = vrot.slane %v2347_v48, 4  ;;  %v3905_v63 = vpop.permute.xlu2 %2167 }
 0x4c3   : > { %v2394_v62 = vrot.slane %v2351_v40, 4  ;;  %v2364_v5 = vrot.slane %v2335_v0, 4  ;;  %v2402_v7 = vrot.slane %v2363_v51, 4  ;;  %v2440_v29 = vrot.slane %v3856_v13, 4 }
 0x4c4   : > { %v2367_v60 = vsel %vm269_vm0, %v2335_v0, %v2366_v53  ;;  %v2145_v6 = vpop.permute.xlu1 %2144  ;;  %v2376_v39 = vrot.slane %v2339_v2, 4  ;;  %v2379_v8 = vsel %vm269_vm0, %v2339_v2, %v2378_v54  ;;  %v2398_v14 = vrot.slane %v2359_v1, 4 }
 0x4c5   : > { %v2375_v36 = vperm.slane %v2367_v60, %v3111_v16  ;;  %v2142_v10 = vpop.permute.xlu0 %2141  ;;  %v2365_v15 = vsel %vm269_vm0, %v2364_v5, %v2323_v47  ;;  %v2387_v12 = vperm.slane %v2379_v8, %v3111_v16  ;;  %v2404_v17 = vrot.slane %v2145_v6, 4 }
 0x4c6   : > { %v2371_v18 = vperm.slane %v2365_v15, %v3111_v16  ;;  %v2377_v20 = vsel %vm269_vm0, %v2376_v39, %v2327_v42  ;;  %v2407_v30 = vsel %vm269_vm0, %v2145_v6, %v2406_v3  ;;  %v2417_v35 = vsel %vm269_vm0, %v2416_v19, %v2142_v10 }
 0x4c7   : > { %v2392_v21 = vrot.slane %v2375_v36, 4  ;;  %v2395_v22 = vsel %vm269_vm0, %v2375_v36, %v2394_v62  ;;  %v2383_v23 = vperm.slane %v2377_v20, %v3111_v16  ;;  %v2400_v52 = vrot.slane %v2387_v12, 4 }
 0x4c8   : > { %v2403_v49 = vsel %vm269_vm0, %v2387_v12, %v2402_v7  ;;  %2641 = vst.msk [vmem:[%s3795_s16 + $0x68] sm:$0xff] %vm520_vm2, %v2395_v22  ;;  %v2405_v24 = vsel %vm269_vm0, %v2404_v17, %v3717_v55  ;;  %v2388_v27 = vrot.slane %v2371_v18, 4  ;;  %v2391_v50 = vsel %vm269_vm0, %v2371_v18, %v2390_v4 }
 0x4c9   : > { %v2393_v28 = vsel %vm269_vm0, %v2392_v21, %v2351_v40  ;;  %2657 = vst.msk [vmem:[%s3795_s16 + $0xe8] sm:$0xff] %vm520_vm2, %v2403_v49  ;;  %v2396_v31 = vrot.slane %v2383_v23, 4  ;;  %v2399_v32 = vsel %vm269_vm0, %v2383_v23, %v2398_v14  ;;  %v2411_v55 = vperm.slane %v2405_v24, %v3109_v11 }
 0x4ca   : > { %2633 = vst.msk [vmem:[%s3795_s16 + $0x28] sm:$0xff] %vm520_vm2, %v2391_v50  ;;  %v2389_v33 = vsel %vm269_vm0, %v2388_v27, %v2347_v48  ;;  %v2415_v34 = vperm.slane %v2407_v30, %v3109_v11  ;;  %v2418_v37 = vrot.slane %v2142_v10, 4  ;;  %v2401_v41 = vsel %vm269_vm0, %v2400_v52, %v2363_v51 }
 0x4cb   : > { %2637 = vst.msk [vmem:[%s3795_s16 + $0x48] sm:$0xff] %vm520_vm2, %v2393_v28  ;;  %v2397_v38 = vsel %vm269_vm0, %v2396_v31, %v2359_v1  ;;  %v2454_v42 = vrot.slane %v2411_v55, 4  ;;  %v2423_v40 = vperm.slane %v2417_v35, %v3109_v11  ;;  %v2518_v5 = vrot.slane %v3733_v59, 4 }
 0x4cc   : > { %2629 = vst.msk [vmem:[%s3795_s16 + $0x8] sm:$0xff] %vm520_vm2, %v2389_v33  ;;  %v2155_v9 = vpop.permute.xlu1 %2154  ;;  %v2466_v43 = vrot.slane %v2415_v34, 4  ;;  %v2419_v44 = vsel %vm269_vm0, %v3816_v26, %v2418_v37  ;;  %v2528_v36 = vrot.slane %v3905_v63, 4 }
 0x4cd   : > { %2645 = vst.msk [vmem:[%s3795_s16 + $0x88] sm:$0xff] %vm520_vm2, %v2397_v38  ;;  %v2428_v45 = vrot.slane %v2155_v9, 4  ;;  %v2431_v25 = vsel %vm269_vm0, %v2155_v9, %v2430_v56  ;;  %v2152_v46 = vpop.permute.xlu0 %2151  ;;  %v2427_v47 = vperm.slane %v2419_v44, %v3109_v11  ;;  %v2452_v48 = vrot.slane %v2423_v40, 4 }
 0x4ce   : > { %2649 = vst.msk [vmem:[%s3795_s16 + $0xa8] sm:$0xff] %vm520_vm2, %v2399_v32  ;;  %v2455_v51 = vsel %vm269_vm0, %v2423_v40, %v2454_v42  ;;  %v2439_v54 = vperm.slane %v2431_v25, %v3109_v11  ;;  %v2441_v53 = vsel %vm269_vm0, %v2440_v29, %v2152_v46  ;;  %v2442_v56 = vrot.slane %v2152_v46, 4 }
 0x4cf   : > { %2653 = vst.msk [vmem:[%s3795_s16 + $0xc8] sm:$0xff] %vm520_vm2, %v2401_v41  ;;  %v2463_v58 = vperm.slane %v2455_v51, %v3111_v16  ;;  %v2429_v26 = vsel %vm269_vm0, %v2428_v45, %v3725_v57  ;;  %v2453_v0 = vsel %vm269_vm0, %v2452_v48, %v2411_v55  ;;  %v2464_v19 = vrot.slane %v2427_v47, 4  ;;  %v2178_v41 = vpop.permute.xlu2 %2177 }
 0x4d0   : > { %v2467_v1 = vsel %vm269_vm0, %v2427_v47, %v2466_v43  ;;  %v2435_v2 = vperm.slane %v2429_v26, %v3109_v11  ;;  %v2459_v3 = vperm.slane %v2453_v0, %v3111_v16  ;;  %v2490_v62 = vrot.slane %v2439_v54, 4 }
 0x4d1   : > { %v2475_v4 = vperm.slane %v2467_v1, %v3111_v16  ;;  %v2465_v57 = vsel %vm269_vm0, %v2464_v19, %v2415_v34  ;;  %v2443_v6 = vsel %vm269_vm0, %v3856_v13, %v2442_v56  ;;  %v2447_v7 = vperm.slane %v2441_v53, %v3109_v11 }
 0x4d2   : > { %v2478_v60 = vrot.slane %v2435_v2, 4  ;;  %v2471_v39 = vperm.slane %v2465_v57, %v3111_v16  ;;  %v2506_v8 = vrot.slane %v2463_v58, 4  ;;  %v2451_v10 = vperm.slane %v2443_v6, %v3109_v11 }
 0x4d3   : > { %v2502_v14 = vrot.slane %v2459_v3, 4  ;;  %v2514_v15 = vrot.slane %v2475_v4, 4  ;;  %v2476_v12 = vrot.slane %v2447_v7, 4 }
 0x4d4   : > { %v2479_v17 = vsel %vm269_vm0, %v2447_v7, %v2478_v60  ;;  %v2165_v18 = vpop.permute.xlu1 %2164  ;;  %v2510_v20 = vrot.slane %v2471_v39, 4  ;;  %v2488_v13 = vrot.slane %v2451_v10, 4  ;;  %v2491_v22 = vsel %vm269_vm0, %v2451_v10, %v2490_v62 }
 0x4d5   : > { %v2487_v21 = vperm.slane %v2479_v17, %v3111_v16  ;;  %v2162_v23 = vpop.permute.xlu0 %2161  ;;  %v2477_v52 = vsel %vm269_vm0, %v2476_v12, %v2435_v2  ;;  %v2499_v49 = vperm.slane %v2491_v22, %v3111_v16  ;;  %v2516_v24 = vrot.slane %v2165_v18, 4 }
 0x4d6   : > { %v2519_v27 = vsel %vm269_vm0, %v2165_v18, %v2518_v5  ;;  %v2483_v50 = vperm.slane %v2477_v52, %v3111_v16  ;;  %v2489_v28 = vsel %vm269_vm0, %v2488_v13, %v2439_v54  ;;  %v2529_v45 = vsel %vm269_vm0, %v2528_v36, %v2162_v23 }
 0x4d7   : > { %v2504_v30 = vrot.slane %v2487_v21, 4  ;;  %v2507_v29 = vsel %vm269_vm0, %v2487_v21, %v2506_v8  ;;  %v2495_v31 = vperm.slane %v2489_v28, %v3111_v16  ;;  %v2512_v32 = vrot.slane %v2499_v49, 4 }
 0x4d8   : > { %v2515_v55 = vsel %vm269_vm0, %v2499_v49, %v2514_v15  ;;  %2642 = vst.msk [vmem:[%s3795_s16 + $0x70] sm:$0xff] %vm520_vm2, %v2507_v29  ;;  %v2517_v33 = vsel %vm269_vm0, %v2516_v24, %v3733_v59  ;;  %v2500_v34 = vrot.slane %v2483_v50, 4  ;;  %v2503_v35 = vsel %vm269_vm0, %v2483_v50, %v2502_v14 }
 0x4d9   : > { %v2505_v37 = vsel %vm269_vm0, %v2504_v30, %v2463_v58  ;;  %2658 = vst.msk [vmem:[%s3795_s16 + $0xf0] sm:$0xff] %vm520_vm2, %v2515_v55  ;;  %v2523_v38 = vperm.slane %v2517_v33, %v3109_v11  ;;  %v2508_v42 = vrot.slane %v2495_v31, 4  ;;  %v2511_v40 = vsel %vm269_vm0, %v2495_v31, %v2510_v20 }
 0x4da   : > { %2634 = vst.msk [vmem:[%s3795_s16 + $0x30] sm:$0xff] %vm520_vm2, %v2503_v35  ;;  %v2527_v9 = vperm.slane %v2519_v27, %v3109_v11  ;;  %v2542_v59 = vrot.slane %v3741_v61, 4  ;;  %v2501_v43 = vsel %vm269_vm0, %v2500_v34, %v2459_v3  ;;  %v2530_v25 = vrot.slane %v2162_v23, 4 }
 0x4db   : > { %2638 = vst.msk [vmem:[%s3795_s16 + $0x50] sm:$0xff] %vm520_vm2, %v2505_v37  ;;  %v2566_v44 = vrot.slane %v2523_v38, 4  ;;  %v2509_v46 = vsel %vm269_vm0, %v2508_v42, %v2471_v39  ;;  %v2513_v47 = vsel %vm269_vm0, %v2512_v32, %v2475_v4  ;;  %v2535_v51 = vperm.slane %v2529_v45, %v3109_v11 }
 0x4dc   : > { %2630 = vst.msk [vmem:[%s3795_s16 + $0x10] sm:$0xff] %vm520_vm2, %v2501_v43  ;;  %v2578_v48 = vrot.slane %v2527_v9, 4  ;;  %v2175_v54 = vpop.permute.xlu1 %2174  ;;  %v2552_v58 = vrot.slane %v2178_v41, 4  ;;  %v2531_v26 = vsel %vm269_vm0, %v3905_v63, %v2530_v25 }
 0x4dd   : > { %2646 = vst.msk [vmem:[%s3795_s16 + $0x90] sm:$0xff] %vm520_vm2, %v2509_v46  ;;  %v2540_v53 = vrot.slane %v2175_v54, 4  ;;  %v2543_v56 = vsel %vm269_vm0, %v2175_v54, %v2542_v59  ;;  %v2172_v0 = vpop.permute.xlu0 %2171  ;;  %v2539_v19 = vperm.slane %v2531_v26, %v3109_v11  ;;  %v2564_v1 = vrot.slane %v2535_v51, 4 }
 0x4de   : > { %2650 = vst.msk [vmem:[%s3795_s16 + $0xb0] sm:$0xff] %vm520_vm2, %v2511_v40  ;;  %v2567_v2 = vsel %vm269_vm0, %v2535_v51, %v2566_v44  ;;  %v2551_v3 = vperm.slane %v2543_v56, %v3109_v11  ;;  %v2553_v62 = vsel %vm269_vm0, %v2552_v58, %v2172_v0  ;;  %v2554_v5 = vrot.slane %v2172_v0, 4 }
 0x4df   : > { %2654 = vst.msk [vmem:[%s3795_s16 + $0xd0] sm:$0xff] %vm520_vm2, %v2513_v47  ;;  %v2575_v4 = vperm.slane %v2567_v2, %v3111_v16  ;;  %v2541_v63 = vsel %vm269_vm0, %v2540_v53, %v3741_v61  ;;  %v2565_v57 = vsel %vm269_vm0, %v2564_v1, %v2523_v38  ;;  %v2576_v60 = vrot.slane %v2539_v19, 4 }
 0x4e0   : > { %v2579_v6 = vsel %vm269_vm0, %v2539_v19, %v2578_v48  ;;  %v2547_v7 = vperm.slane %v2541_v63, %v3109_v11  ;;  %v2571_v36 = vperm.slane %v2565_v57, %v3111_v16  ;;  %v2602_v8 = vrot.slane %v2551_v3, 4 }
 0x4e1   : > { %v2587_v39 = vperm.slane %v2579_v6, %v3111_v16  ;;  %v2577_v10 = vsel %vm269_vm0, %v2576_v60, %v2527_v9  ;;  %v2555_v61 = vsel %vm269_vm0, %v2178_v41, %v2554_v5  ;;  %v2559_v15 = vperm.slane %v2553_v62, %v3109_v11 }
 0x4e2   : > { %v2590_v14 = vrot.slane %v2547_v7, 4  ;;  %v2563_v12 = vperm.slane %v2555_v61, %v3109_v11  ;;  %v2618_v17 = vrot.slane %v2575_v4, 4  ;;  %v2583_v21 = vperm.slane %v2577_v10, %v3111_v16 }
 0x4e3   : > { %v2588_v18 = vrot.slane %v2559_v15, 4  ;;  %v2614_v52 = vrot.slane %v2571_v36, 4  ;;  %v2626_v49 = vrot.slane %v2587_v39, 4 }
 0x4e4   : > { %v2591_v20 = vsel %vm269_vm0, %v2559_v15, %v2590_v14  ;;  %v2600_v22 = vrot.slane %v2563_v12, 4  ;;  %v2603_v23 = vsel %vm269_vm0, %v2563_v12, %v2602_v8  ;;  %v2622_v55 = vrot.slane %v2583_v21, 4 }
 0x4e5   : > { %v2599_v13 = vperm.slane %v2591_v20, %v3111_v16  ;;  %v2589_v24 = vsel %vm269_vm0, %v2588_v18, %v2547_v7  ;;  %v2611_v11 = vperm.slane %v2603_v23, %v3111_v16 }
 0x4e6   : > { %v2595_v27 = vperm.slane %v2589_v24, %v3111_v16  ;;  %v2601_v50 = vsel %vm269_vm0, %v2600_v22, %v2551_v3 }
 0x4e7   : > { %v2616_v28 = vrot.slane %v2599_v13, 4  ;;  %v2619_v30 = vsel %vm269_vm0, %v2599_v13, %v2618_v17  ;;  %v2607_v29 = vperm.slane %v2601_v50, %v3111_v16  ;;  %v2624_v31 = vrot.slane %v2611_v11, 4 }
 0x4e8   : > { %v2627_v32 = vsel %vm269_vm0, %v2611_v11, %v2626_v49  ;;  %2643 = vst.msk [vmem:[%s3795_s16 + $0x78] sm:$0xff] %vm520_vm2, %v2619_v30  ;;  %v2612_v33 = vrot.slane %v2595_v27, 4  ;;  %v2615_v34 = vsel %vm269_vm0, %v2595_v27, %v2614_v52 }
 0x4e9   : > { %v2617_v35 = vsel %vm269_vm0, %v2616_v28, %v2575_v4  ;;  %2659 = vst.msk [vmem:[%s3795_s16 + $0xf8] sm:$0xff] %vm520_vm2, %v2627_v32  ;;  %v2620_v16 = vrot.slane %v2607_v29, 4  ;;  %v2623_v38 = vsel %vm269_vm0, %v2607_v29, %v2622_v55  ;;  %v2625_v42 = vsel %vm269_vm0, %v2624_v31, %v2587_v39 }
 0x4ea   : > { %2635 = vst.msk [vmem:[%s3795_s16 + $0x38] sm:$0xff] %vm520_vm2, %v2615_v34  ;;  %v2613_v37 = vsel %vm269_vm0, %v2612_v33, %v2571_v36 }
 0x4eb   : > { %2639 = vst.msk [vmem:[%s3795_s16 + $0x58] sm:$0xff] %vm520_vm2, %v2617_v35  ;;  %v2621_v41 = vsel %vm269_vm0, %v2620_v16, %v2583_v21 }
 0x4ec   : > { %2631 = vst.msk [vmem:[%s3795_s16 + $0x18] sm:$0xff] %vm520_vm2, %v2613_v37 }
 0x4ed   : > { %2647 = vst.msk [vmem:[%s3795_s16 + $0x98] sm:$0xff] %vm520_vm2, %v2621_v41 }
 0x4ee   : > { %2651 = vst.msk [vmem:[%s3795_s16 + $0xb8] sm:$0xff] %vm520_vm2, %v2623_v38 }
 0x4ef   : > { %2655 = vst.msk [vmem:[%s3795_s16 + $0xd8] sm:$0xff] %vm520_vm2, %v2625_v42 }
 0x4f0   : > { %2953 = shalt.err (!%p2950_p5)
}
 0x4f1   : > { %s3017_s14 = smov 128   ;;  %s3018_s16 = smov 8  }
 0x4f2   : > { %2832 = dma.vmem_to_hbm [thread:$0]  (%p3089_p4), %s2676_s12, 4096, %s2678_s13, %s2661_s15, %s3017_s14, %s3017_s14, %s3018_s16  }
 0x4f3 PF: > { %p2838_p6 = scmp.ge.s32.totalorder %s3004_s23, 2  ;;  %s2692_s9 = sand.u32 1, %s2984_s18  }
 0x4f4   : > { %s2693_s21 = scalar_lea.sflag [#allocation3], %s2692_s9 }
 0x4f5   : > { %p2835_p7 = pnand %p2838_p6, %p3096_p8 }
 0x4f7   : > { %p2836_p9 = pneg %p2835_p7 }
 0x4f9   : > { %2979 = dma.done.wait (%p2836_p9), %s2693_s21, 4096  }
 0x4fa   : > { %2981 = vsyncadd (%p2836_p9), %s2693_s21, 4294963200  ;;  %s18_s23 = sadd.s32 1, %s3004_s23   ;;  %s4059_s18 = smov %s2988_s19 }
 0x4fb   : > { %p15_p10 = scmp.ge.s32.totalorder %s18_s23, 4   ;;  %s4060_s19 = smov %s2992_s20 }
 0x4fc   : > { %s4061_s20 = smov %s3102_s6  ;;  %s4062_s21 = smov %s3000_s22 }
 0x4fd   : > { %s4063_s22 = smov %s4065_s26  ;;  %17 = sbr.rel (!%p15_p10) target bundleno = 4 (0x4), region = 85 }
 0x502   :  { %2699 = vsyncpa [#allocation3], 1 }
 0x503   :  { %2701 = vsyncpa [#allocation3 + $0x1], 1 }

</bundles_post_ra>
